<compile_context>
chip_gen: v7x
topology: tpu7x:2x2x1
jax: 0.10.0
libtpu: 0.0.40
codegen_flags: <defaults>
</compile_context>

<pallas_src>
import functools
import math

import jax
import jax.numpy as jnp
from jax import lax
from jax.experimental import pallas as pl
from jax.experimental.pallas import tpu as pltpu


# ----------------------------- sinusoid tables (plain JAX glue) ----------------------

def sinusoid_table(positions, dim):
    """Rows = [sin(p*f), cos(p*f)] for each position p; matches RelativeEmbedding."""
    assert dim % 2 == 0 and dim >= 4
    half = dim // 2
    freq = jnp.exp(jnp.arange(half, dtype=jnp.float32) * (-math.log(10000.0) / (half - 1)))
    ang = positions.astype(jnp.float32)[:, None] * freq[None, :]
    return jnp.concatenate([jnp.sin(ang), jnp.cos(ang)], axis=1)


def _layer_norm(x, gamma, beta, eps=1e-5):
    mean = jnp.mean(x, axis=-1, keepdims=True)
    var = jnp.mean((x - mean) ** 2, axis=-1, keepdims=True)
    return (x - mean) * lax.rsqrt(var + eps) * gamma + beta


# ----------------------------- Pallas kernel ------------------------------------------

def relative_transformer_kernel(
    x_ref, mask_ref, wq_ref, wv_ref, rr_ref, rw_ref, pe_ref,
    ln1g_ref, ln1b_ref, ln2g_ref, ln2b_ref,
    w1_ref, b1_ref, w2_ref, b2_ref,
    o_ref, att_ref, *, n_head, head_dim, compute_dtype):
    f32 = jnp.float32
    cd = compute_dtype
    half = head_dim // 2

    x = x_ref[0]                                     # (L, D) f32
    mask = mask_ref[0]                               # (1, L) f32, 0 == pad
    # finite additive mask bias: no -inf arithmetic -> no NaN even for fully-padded rows
    neg_bias = jnp.where(mask == 0.0, -1e30, 0.0).astype(f32)          # (1, L)

    # qv_linear (no bias); k = x itself, exactly as in the reference module.
    xc = x.astype(cd)
    q = jnp.dot(xc, wq_ref[...], preferred_element_type=f32)           # (L, D) f32
    v = jnp.dot(xc, wv_ref[...], preferred_element_type=f32)           # (L, D) f32

    # hoisted full-width bias adds (r_r / r_w pre-tiled to (1, D) in the wrapper)
    q_rr = q + rr_ref[...]                           # content-term query  (L, D)
    q_rw = q + rw_ref[...]                           # position-term query (L, D)

    # pe_pos[p] = [sin(p*f), cos(p*f)], p = 0..L-1
    pe = pe_ref[...]                                 # (L, hd) f32
    sin_q = pe[:, :half]                             # (L, hd/2)
    cos_q = pe[:, half:]                             # (L, hd/2)

    # Split heads -> (n_head, L, hd).  The per-head BD query is rotated by its own position so
    #   rot(q_rw_h)[q] . pe_pos[k]  ==  q_rw_h[q] . pos_embed[k - q + L]   (exact identity),
    # i.e. the reference "_shift" is folded into an elementwise rotation + one MXU matmul.
    q_l, k_l, v_l, r_l = [], [], [], []
    for h in range(n_head):
        sl = slice(h * head_dim, (h + 1) * head_dim)
        q_l.append(q_rr[:, sl])
        k_l.append(x[:, sl])
        v_l.append(v[:, sl])
        qw = q_rw[:, sl]
        qs, qc = qw[:, :half], qw[:, half:]
        r_l.append(jnp.concatenate([qs * cos_q + qc * sin_q,
                                    qc * cos_q - qs * sin_q], axis=-1))
    q3 = jnp.stack(q_l, axis=0).astype(cd)           # (H, L, hd)
    k3 = jnp.stack(k_l, axis=0).astype(cd)           # (H, L, hd)
    v3 = jnp.stack(v_l, axis=0).astype(cd)           # (H, L, hd)
    rot3 = jnp.stack(r_l, axis=0).astype(cd)         # (H, L, hd)
    pe3 = jnp.broadcast_to(pe.astype(cd)[None], (n_head,) + pe.shape)  # (H, L, hd)

    # batched-head attention scores on the MXU (f32 accumulation)
    ac = jnp.einsum('hqd,hkd->hqk', q3, k3, preferred_element_type=f32)     # (H, L, L)
    bd = jnp.einsum('hqd,hkd->hqk', rot3, pe3, preferred_element_type=f32)  # (H, L, L)
    logits = ac + bd + neg_bias

    m = jnp.max(logits, axis=-1, keepdims=True)
    e = jnp.exp(logits - m)
    s = jnp.sum(e, axis=-1, keepdims=True)
    attn = e * pl.reciprocal(s, approx=True)         # attention dropout -> identity
    ctx = jnp.einsum('hqk,hkd->hqd', attn.astype(cd), v3,
                     preferred_element_type=f32)     # (H, L, hd)

    # write each head directly into its column slice of the (L, D) scratch (no lane concat)
    for h in range(n_head):
        att_ref[:, h * head_dim:(h + 1) * head_dim] = ctx[h]
    att = att_ref[...]

    # residual + post-norm (after_norm=True)
    x1 = _layer_norm(att + x, ln1g_ref[...], ln1b_ref[...])

    # FFN: Linear -> ReLU -> Linear (dropouts are identity)
    h1 = jnp.maximum(
        jnp.dot(x1.astype(cd), w1_ref[...], preferred_element_type=f32) + b1_ref[...], 0.0)
    y = jnp.dot(h1.astype(cd), w2_ref[...], preferred_element_type=f32) + b2_ref[...]

    x2 = _layer_norm(x1 + y, ln2g_ref[...], ln2b_ref[...])
    o_ref[0] = x2.astype(o_ref.dtype)


# ----------------------------- wrapper -------------------------------------------------

def relative_transformer_layer(x, mask, params, n_head, compute_dtype=jnp.bfloat16):
    B, L, D = x.shape
    hd = D // n_head
    H = params["w1"].shape[1]
    cd = compute_dtype

    mask3 = mask.reshape(B, 1, L).astype(jnp.float32)
    pe_pos = sinusoid_table(jnp.arange(L), hd)                   # (L, hd) f32

    # matmul weights in the compute dtype (halves weight DMA in bf16); rest stays f32
    wq = params["wq"].astype(cd)
    wv = params["wv"].astype(cd)
    w1 = params["w1"].astype(cd)
    w2 = params["w2"].astype(cd)
    rr = params["r_r"].reshape(1, D).astype(jnp.float32)         # tiled per-head biases
    rw = params["r_w"].reshape(1, D).astype(jnp.float32)

    def full(shape):
        zeros = (0,) * len(shape)
        return pl.BlockSpec(shape, lambda b: zeros)

    kernel = functools.partial(relative_transformer_kernel,
                               n_head=n_head, head_dim=hd, compute_dtype=cd)

    return pl.pallas_call(
        kernel,
        out_shape=jax.ShapeDtypeStruct((B, L, D), x.dtype),
        grid=(B,),
        in_specs=[
            pl.BlockSpec((1, L, D), lambda b: (b, 0, 0)),   # x
            pl.BlockSpec((1, 1, L), lambda b: (b, 0, 0)),   # mask
            full((D, D)), full((D, D)),                     # Wq, Wv
            full((1, D)), full((1, D)),                     # r_r, r_w (tiled to (1, D))
            full((L, hd)),                                  # pe_pos sinusoid table
            full((1, D)), full((1, D)),                     # LN1 gamma/beta
            full((1, D)), full((1, D)),                     # LN2 gamma/beta
            full((D, H)), full((1, H)),                     # FFN W1, b1
            full((H, D)), full((1, D)),                     # FFN W2, b2
        ],
        out_specs=pl.BlockSpec((1, L, D), lambda b: (b, 0, 0)),
        scratch_shapes=[pltpu.VMEM((L, D), jnp.float32)],   # per-head context accumulator
        compiler_params=pltpu.CompilerParams(
            dimension_semantics=("parallel",),              # batch rows independent (2 TCs on v7x)
            vmem_limit_bytes=32 * 1024 * 1024),             # explicit budget; re-derive per gen
    )(x, mask3, wq, wv, rr, rw, pe_pos,
      params["ln1_g"], params["ln1_b"], params["ln2_g"], params["ln2_b"],
      w1, params["b1"], w2, params["b2"])


# ----------------------------- pure-JAX reference --------------------------------------

def _shift_ref(BD):
    b, n, L, _ = BD.shape
    BD = jnp.concatenate([BD, jnp.zeros((b, n, L, 1), BD.dtype)], axis=-1)
    BD = BD.reshape(b, n, -1, L)[:, :, :-1].reshape(b, n, L, -1)
    return BD[:, :, :, L:]


def reference_layer(x, mask, params, n_head):
    B, L, D = x.shape
    hd = D // n_head
    pe = sinusoid_table(jnp.arange(-L, L), hd)

    q = x @ params["wq"]
    v = x @ params["wv"]
    q = q.reshape(B, L, n_head, hd).transpose(0, 2, 1, 3)
    k = x.reshape(B, L, n_head, hd).transpose(0, 2, 1, 3)
    vv = v.reshape(B, L, n_head, hd).transpose(0, 2, 1, 3)

    rwq = q + params["r_r"][None, :, None, :]
    AC = jnp.einsum("bnqd,bnkd->bnqk", rwq, k)
    D_ = jnp.einsum("nd,ld->nl", params["r_w"], pe)[None, :, None, :]
    B_ = jnp.einsum("bnqd,ld->bnql", q, pe)
    BD = _shift_ref(B_ + D_)

    attn = AC + BD
    attn = jnp.where((mask == 0)[:, None, None, :], -jnp.inf, attn)
    attn = jax.nn.softmax(attn, axis=-1)
    out = jnp.einsum("bnqk,bnkd->bnqd", attn, vv).transpose(0, 2, 1, 3).reshape(B, L, D)

    x1 = _layer_norm(out + x, params["ln1_g"], params["ln1_b"])
    h1 = jax.nn.relu(x1 @ params["w1"] + params["b1"])
    y = h1 @ params["w2"] + params["b2"]
    return _layer_norm(x1 + y, params["ln2_g"], params["ln2_b"])


# ----------------------------- main -----------------------------------------------------

if __name__ == "__main__":
    B, L, D, n_head, H = 2, 16, 32, 4, 64   # head_dim = 8
    hd = D // n_head

    key = jax.random.PRNGKey(0)
    ks = jax.random.split(key, 10)
    params = {
        "wq": 0.2 * jax.random.normal(ks[0], (D, D), jnp.float32),
        "wv": 0.2 * jax.random.normal(ks[1], (D, D), jnp.float32),
        "r_r": 0.3 * jax.random.normal(ks[2], (n_head, hd), jnp.float32),
        "r_w": 0.3 * jax.random.normal(ks[3], (n_head, hd), jnp.float32),
        "ln1_g": jnp.ones((1, D), jnp.float32), "ln1_b": jnp.zeros((1, D), jnp.float32),
        "ln2_g": jnp.ones((1, D), jnp.float32), "ln2_b": jnp.zeros((1, D), jnp.float32),
        "w1": 0.2 * jax.random.normal(ks[4], (D, H), jnp.float32),
        "b1": 0.05 * jax.random.normal(ks[5], (1, H), jnp.float32),
        "w2": 0.2 * jax.random.normal(ks[6], (H, D), jnp.float32),
        "b2": 0.05 * jax.random.normal(ks[7], (1, D), jnp.float32),
    }

    x = jax.random.normal(ks[8], (B, L, D), jnp.float32)
    mask = jnp.ones((B, L), jnp.float32).at[1, 12:].set(0.0)   # last 4 tokens of batch 1 are pad

    ref = reference_layer(x, mask, params, n_head)

    # fast path (bf16 matmul operands, f32 accumulation) — the production configuration
    out = relative_transformer_layer(x, mask, params, n_head)                 # default bf16
    out = jax.block_until_ready(out)
    # f32 path — tight algorithmic check of the shift-free BD rewrite / batched heads
    out_f32 = relative_transformer_layer(x, mask, params, n_head,
                                         compute_dtype=jnp.float32)
    out_f32 = jax.block_until_ready(out_f32)

    assert out.shape == (B, L, D)
    assert bool(jnp.isfinite(out).all())
    assert jnp.allclose(out_f32, ref, atol=2e-2, rtol=2e-2), "f32 kernel mismatch vs reference"
    assert jnp.allclose(out, ref, atol=1e-1, rtol=1e-1), "bf16 kernel outside expected band"

    print("KERNEL_OK")
</pallas_src>

<mosaic_0001>
module attributes {stable_mosaic.version = 11 : i64} {
  func.func @relative_transformer_kernel(%arg0: i32, %arg1: memref<1x16x32xf32, #tpu.memory_space<vmem>>, %arg2: memref<1x1x16xf32, #tpu.memory_space<vmem>>, %arg3: memref<32x32xbf16, #tpu.memory_space<vmem>>, %arg4: memref<32x32xbf16, #tpu.memory_space<vmem>>, %arg5: memref<1x32xf32, #tpu.memory_space<vmem>>, %arg6: memref<1x32xf32, #tpu.memory_space<vmem>>, %arg7: memref<16x8xf32, #tpu.memory_space<vmem>>, %arg8: memref<1x32xf32, #tpu.memory_space<vmem>>, %arg9: memref<1x32xf32, #tpu.memory_space<vmem>>, %arg10: memref<1x32xf32, #tpu.memory_space<vmem>>, %arg11: memref<1x32xf32, #tpu.memory_space<vmem>>, %arg12: memref<32x64xbf16, #tpu.memory_space<vmem>>, %arg13: memref<1x64xf32, #tpu.memory_space<vmem>>, %arg14: memref<64x32xbf16, #tpu.memory_space<vmem>>, %arg15: memref<1x32xf32, #tpu.memory_space<vmem>>, %arg16: memref<1x16x32xf32, #tpu.memory_space<vmem>>, %arg17: memref<16x32xf32, #tpu.memory_space<vmem>>) attributes {dimension_semantics = [#tpu.dimension_semantics<parallel>], iteration_bounds = array<i64: 2>, scalar_prefetch = 0 : i64, scratch_operands = 1 : i64, tpu.core_type = #tpu.core_type<tc>, window_params = [{transform_indices = @transform_0, window_bounds = array<i64: 1, 16, 32>}, {transform_indices = @transform_1, window_bounds = array<i64: 1, 1, 16>}, {pipeline_mode = #tpu.pipeline_mode<synchronous>, transform_indices = @transform_2, window_bounds = array<i64: 32, 32>}, {pipeline_mode = #tpu.pipeline_mode<synchronous>, transform_indices = @transform_3, window_bounds = array<i64: 32, 32>}, {pipeline_mode = #tpu.pipeline_mode<synchronous>, transform_indices = @transform_4, window_bounds = array<i64: 1, 32>}, {pipeline_mode = #tpu.pipeline_mode<synchronous>, transform_indices = @transform_5, window_bounds = array<i64: 1, 32>}, {pipeline_mode = #tpu.pipeline_mode<synchronous>, transform_indices = @transform_6, window_bounds = array<i64: 16, 8>}, {pipeline_mode = #tpu.pipeline_mode<synchronous>, transform_indices = @transform_7, window_bounds = array<i64: 1, 32>}, {pipeline_mode = #tpu.pipeline_mode<synchronous>, transform_indices = @transform_8, window_bounds = array<i64: 1, 32>}, {pipeline_mode = #tpu.pipeline_mode<synchronous>, transform_indices = @transform_9, window_bounds = array<i64: 1, 32>}, {pipeline_mode = #tpu.pipeline_mode<synchronous>, transform_indices = @transform_10, window_bounds = array<i64: 1, 32>}, {pipeline_mode = #tpu.pipeline_mode<synchronous>, transform_indices = @transform_11, window_bounds = array<i64: 32, 64>}, {pipeline_mode = #tpu.pipeline_mode<synchronous>, transform_indices = @transform_12, window_bounds = array<i64: 1, 64>}, {pipeline_mode = #tpu.pipeline_mode<synchronous>, transform_indices = @transform_13, window_bounds = array<i64: 64, 32>}, {pipeline_mode = #tpu.pipeline_mode<synchronous>, transform_indices = @transform_14, window_bounds = array<i64: 1, 32>}, {transform_indices = @transform_15, window_bounds = array<i64: 1, 16, 32>}]} {
    %c0 = arith.constant 0 : index
    %c0_0 = arith.constant 0 : index
    %c0_1 = arith.constant 0 : index
    %0 = vector.load %arg1[%c0, %c0_0, %c0_1] : memref<1x16x32xf32, #tpu.memory_space<vmem>>, vector<1x16x32xf32>
    %1 = vector.shape_cast %0 : vector<1x16x32xf32> to vector<16x32xf32>
    %c0_2 = arith.constant 0 : index
    %c0_3 = arith.constant 0 : index
    %c0_4 = arith.constant 0 : index
    %2 = vector.load %arg2[%c0_2, %c0_3, %c0_4] : memref<1x1x16xf32, #tpu.memory_space<vmem>>, vector<1x1x16xf32>
    %3 = vector.shape_cast %2 : vector<1x1x16xf32> to vector<1x16xf32>
    %cst = arith.constant 0.000000e+00 : f32
    %4 = vector.broadcast %cst : f32 to vector<1x16xf32>
    %5 = arith.cmpf oeq, %3, %4 : vector<1x16xf32>
    %cst_5 = arith.constant -1.000000e+30 : f32
    %cst_6 = arith.constant 0.000000e+00 : f32
    %6 = vector.broadcast %cst_5 : f32 to vector<1x16xf32>
    %7 = vector.broadcast %cst_6 : f32 to vector<1x16xf32>
    %8 = arith.select %5, %6, %7 : vector<1x16xi1>, vector<1x16xf32>
    %9 = arith.truncf %1 : vector<16x32xf32> to vector<16x32xbf16>
    %c0_7 = arith.constant 0 : index
    %c0_8 = arith.constant 0 : index
    %10 = vector.load %arg3[%c0_7, %c0_8] : memref<32x32xbf16, #tpu.memory_space<vmem>>, vector<32x32xbf16>
    %cst_9 = arith.constant dense<0.000000e+00> : vector<16x32xf32>
    %11 = tpu.matmul %9, %10, %cst_9 {dimension_numbers = #tpu.dot_dimension_numbers<[1], [0], [0], [1], [0, 0, 1, 1], [], []>} : vector<16x32xbf16>, vector<32x32xbf16>, vector<16x32xf32> -> vector<16x32xf32>
    %c0_10 = arith.constant 0 : index
    %c0_11 = arith.constant 0 : index
    %12 = vector.load %arg4[%c0_10, %c0_11] : memref<32x32xbf16, #tpu.memory_space<vmem>>, vector<32x32xbf16>
    %cst_12 = arith.constant dense<0.000000e+00> : vector<16x32xf32>
    %13 = tpu.matmul %9, %12, %cst_12 {dimension_numbers = #tpu.dot_dimension_numbers<[1], [0], [0], [1], [0, 0, 1, 1], [], []>} : vector<16x32xbf16>, vector<32x32xbf16>, vector<16x32xf32> -> vector<16x32xf32>
    %c0_13 = arith.constant 0 : index
    %c0_14 = arith.constant 0 : index
    %14 = vector.load %arg5[%c0_13, %c0_14] : memref<1x32xf32, #tpu.memory_space<vmem>>, vector<1x32xf32>
    %15 = vector.broadcast %14 : vector<1x32xf32> to vector<16x32xf32>
    %16 = arith.addf %11, %15 : vector<16x32xf32>
    %c0_15 = arith.constant 0 : index
    %c0_16 = arith.constant 0 : index
    %17 = vector.load %arg6[%c0_15, %c0_16] : memref<1x32xf32, #tpu.memory_space<vmem>>, vector<1x32xf32>
    %18 = vector.broadcast %17 : vector<1x32xf32> to vector<16x32xf32>
    %19 = arith.addf %11, %18 : vector<16x32xf32>
    %c0_17 = arith.constant 0 : index
    %c0_18 = arith.constant 0 : index
    %20 = vector.load %arg7[%c0_17, %c0_18] : memref<16x8xf32, #tpu.memory_space<vmem>>, vector<16x8xf32>
    %21 = vector.extract_strided_slice %20 {offsets = [0, 0], sizes = [16, 4], strides = [1, 1]} : vector<16x8xf32> to vector<16x4xf32>
    %22 = vector.extract_strided_slice %20 {offsets = [0, 4], sizes = [16, 4], strides = [1, 1]} : vector<16x8xf32> to vector<16x4xf32>
    %23 = vector.extract_strided_slice %16 {offsets = [0, 0], sizes = [16, 8], strides = [1, 1]} : vector<16x32xf32> to vector<16x8xf32>
    %24 = vector.extract_strided_slice %1 {offsets = [0, 0], sizes = [16, 8], strides = [1, 1]} : vector<16x32xf32> to vector<16x8xf32>
    %25 = vector.extract_strided_slice %13 {offsets = [0, 0], sizes = [16, 8], strides = [1, 1]} : vector<16x32xf32> to vector<16x8xf32>
    %26 = vector.extract_strided_slice %19 {offsets = [0, 0], sizes = [16, 8], strides = [1, 1]} : vector<16x32xf32> to vector<16x8xf32>
    %27 = vector.extract_strided_slice %26 {offsets = [0, 0], sizes = [16, 4], strides = [1, 1]} : vector<16x8xf32> to vector<16x4xf32>
    %28 = vector.extract_strided_slice %26 {offsets = [0, 4], sizes = [16, 4], strides = [1, 1]} : vector<16x8xf32> to vector<16x4xf32>
    %29 = arith.mulf %27, %22 : vector<16x4xf32>
    %30 = arith.mulf %28, %21 : vector<16x4xf32>
    %31 = arith.addf %29, %30 : vector<16x4xf32>
    %32 = arith.mulf %28, %22 : vector<16x4xf32>
    %33 = arith.mulf %27, %21 : vector<16x4xf32>
    %34 = arith.subf %32, %33 : vector<16x4xf32>
    %35 = tpu.concatenate %31, %34 in 1 : vector<16x4xf32>, vector<16x4xf32> -> vector<16x8xf32>
    %36 = vector.extract_strided_slice %16 {offsets = [0, 8], sizes = [16, 8], strides = [1, 1]} : vector<16x32xf32> to vector<16x8xf32>
    %37 = vector.extract_strided_slice %1 {offsets = [0, 8], sizes = [16, 8], strides = [1, 1]} : vector<16x32xf32> to vector<16x8xf32>
    %38 = vector.extract_strided_slice %13 {offsets = [0, 8], sizes = [16, 8], strides = [1, 1]} : vector<16x32xf32> to vector<16x8xf32>
    %39 = vector.extract_strided_slice %19 {offsets = [0, 8], sizes = [16, 8], strides = [1, 1]} : vector<16x32xf32> to vector<16x8xf32>
    %40 = vector.extract_strided_slice %39 {offsets = [0, 0], sizes = [16, 4], strides = [1, 1]} : vector<16x8xf32> to vector<16x4xf32>
    %41 = vector.extract_strided_slice %39 {offsets = [0, 4], sizes = [16, 4], strides = [1, 1]} : vector<16x8xf32> to vector<16x4xf32>
    %42 = arith.mulf %40, %22 : vector<16x4xf32>
    %43 = arith.mulf %41, %21 : vector<16x4xf32>
    %44 = arith.addf %42, %43 : vector<16x4xf32>
    %45 = arith.mulf %41, %22 : vector<16x4xf32>
    %46 = arith.mulf %40, %21 : vector<16x4xf32>
    %47 = arith.subf %45, %46 : vector<16x4xf32>
    %48 = tpu.concatenate %44, %47 in 1 : vector<16x4xf32>, vector<16x4xf32> -> vector<16x8xf32>
    %49 = vector.extract_strided_slice %16 {offsets = [0, 16], sizes = [16, 8], strides = [1, 1]} : vector<16x32xf32> to vector<16x8xf32>
    %50 = vector.extract_strided_slice %1 {offsets = [0, 16], sizes = [16, 8], strides = [1, 1]} : vector<16x32xf32> to vector<16x8xf32>
    %51 = vector.extract_strided_slice %13 {offsets = [0, 16], sizes = [16, 8], strides = [1, 1]} : vector<16x32xf32> to vector<16x8xf32>
    %52 = vector.extract_strided_slice %19 {offsets = [0, 16], sizes = [16, 8], strides = [1, 1]} : vector<16x32xf32> to vector<16x8xf32>
    %53 = vector.extract_strided_slice %52 {offsets = [0, 0], sizes = [16, 4], strides = [1, 1]} : vector<16x8xf32> to vector<16x4xf32>
    %54 = vector.extract_strided_slice %52 {offsets = [0, 4], sizes = [16, 4], strides = [1, 1]} : vector<16x8xf32> to vector<16x4xf32>
    %55 = arith.mulf %53, %22 : vector<16x4xf32>
    %56 = arith.mulf %54, %21 : vector<16x4xf32>
    %57 = arith.addf %55, %56 : vector<16x4xf32>
    %58 = arith.mulf %54, %22 : vector<16x4xf32>
    %59 = arith.mulf %53, %21 : vector<16x4xf32>
    %60 = arith.subf %58, %59 : vector<16x4xf32>
    %61 = tpu.concatenate %57, %60 in 1 : vector<16x4xf32>, vector<16x4xf32> -> vector<16x8xf32>
    %62 = vector.extract_strided_slice %16 {offsets = [0, 24], sizes = [16, 8], strides = [1, 1]} : vector<16x32xf32> to vector<16x8xf32>
    %63 = vector.extract_strided_slice %1 {offsets = [0, 24], sizes = [16, 8], strides = [1, 1]} : vector<16x32xf32> to vector<16x8xf32>
    %64 = vector.extract_strided_slice %13 {offsets = [0, 24], sizes = [16, 8], strides = [1, 1]} : vector<16x32xf32> to vector<16x8xf32>
    %65 = vector.extract_strided_slice %19 {offsets = [0, 24], sizes = [16, 8], strides = [1, 1]} : vector<16x32xf32> to vector<16x8xf32>
    %66 = vector.extract_strided_slice %65 {offsets = [0, 0], sizes = [16, 4], strides = [1, 1]} : vector<16x8xf32> to vector<16x4xf32>
    %67 = vector.extract_strided_slice %65 {offsets = [0, 4], sizes = [16, 4], strides = [1, 1]} : vector<16x8xf32> to vector<16x4xf32>
    %68 = arith.mulf %66, %22 : vector<16x4xf32>
    %69 = arith.mulf %67, %21 : vector<16x4xf32>
    %70 = arith.addf %68, %69 : vector<16x4xf32>
    %71 = arith.mulf %67, %22 : vector<16x4xf32>
    %72 = arith.mulf %66, %21 : vector<16x4xf32>
    %73 = arith.subf %71, %72 : vector<16x4xf32>
    %74 = tpu.concatenate %70, %73 in 1 : vector<16x4xf32>, vector<16x4xf32> -> vector<16x8xf32>
    %75 = vector.shape_cast %23 : vector<16x8xf32> to vector<1x16x8xf32>
    %76 = vector.shape_cast %36 : vector<16x8xf32> to vector<1x16x8xf32>
    %77 = vector.shape_cast %49 : vector<16x8xf32> to vector<1x16x8xf32>
    %78 = vector.shape_cast %62 : vector<16x8xf32> to vector<1x16x8xf32>
    %79 = tpu.concatenate %75, %76, %77, %78 in 0 : vector<1x16x8xf32>, vector<1x16x8xf32>, vector<1x16x8xf32>, vector<1x16x8xf32> -> vector<4x16x8xf32>
    %80 = arith.truncf %79 : vector<4x16x8xf32> to vector<4x16x8xbf16>
    %81 = vector.shape_cast %24 : vector<16x8xf32> to vector<1x16x8xf32>
    %82 = vector.shape_cast %37 : vector<16x8xf32> to vector<1x16x8xf32>
    %83 = vector.shape_cast %50 : vector<16x8xf32> to vector<1x16x8xf32>
    %84 = vector.shape_cast %63 : vector<16x8xf32> to vector<1x16x8xf32>
    %85 = tpu.concatenate %81, %82, %83, %84 in 0 : vector<1x16x8xf32>, vector<1x16x8xf32>, vector<1x16x8xf32>, vector<1x16x8xf32> -> vector<4x16x8xf32>
    %86 = arith.truncf %85 : vector<4x16x8xf32> to vector<4x16x8xbf16>
    %87 = vector.shape_cast %25 : vector<16x8xf32> to vector<1x16x8xf32>
    %88 = vector.shape_cast %38 : vector<16x8xf32> to vector<1x16x8xf32>
    %89 = vector.shape_cast %51 : vector<16x8xf32> to vector<1x16x8xf32>
    %90 = vector.shape_cast %64 : vector<16x8xf32> to vector<1x16x8xf32>
    %91 = tpu.concatenate %87, %88, %89, %90 in 0 : vector<1x16x8xf32>, vector<1x16x8xf32>, vector<1x16x8xf32>, vector<1x16x8xf32> -> vector<4x16x8xf32>
    %92 = arith.truncf %91 : vector<4x16x8xf32> to vector<4x16x8xbf16>
    %93 = vector.shape_cast %35 : vector<16x8xf32> to vector<1x16x8xf32>
    %94 = vector.shape_cast %48 : vector<16x8xf32> to vector<1x16x8xf32>
    %95 = vector.shape_cast %61 : vector<16x8xf32> to vector<1x16x8xf32>
    %96 = vector.shape_cast %74 : vector<16x8xf32> to vector<1x16x8xf32>
    %97 = tpu.concatenate %93, %94, %95, %96 in 0 : vector<1x16x8xf32>, vector<1x16x8xf32>, vector<1x16x8xf32>, vector<1x16x8xf32> -> vector<4x16x8xf32>
    %98 = arith.truncf %97 : vector<4x16x8xf32> to vector<4x16x8xbf16>
    %99 = arith.truncf %20 : vector<16x8xf32> to vector<16x8xbf16>
    %100 = vector.shape_cast %99 : vector<16x8xbf16> to vector<1x16x8xbf16>
    %101 = vector.shape_cast %100 : vector<1x16x8xbf16> to vector<1x16x8xbf16>
    %102 = vector.broadcast %101 : vector<1x16x8xbf16> to vector<4x16x8xbf16>
    "tpu.trace_start"() <{level = 10 : i32, message = "hqd,hkd->hqk"}> : () -> ()
    %cst_19 = arith.constant dense<0.000000e+00> : vector<4x16x16xf32>
    %103 = tpu.matmul %80, %86, %cst_19 {dimension_numbers = #tpu.dot_dimension_numbers<[2], [2], [1], [1], [0, 0, 0, 1, 1, 1], [0], [0]>} : vector<4x16x8xbf16>, vector<4x16x8xbf16>, vector<4x16x16xf32> -> vector<4x16x16xf32>
    %cst_20 = arith.constant dense<0.000000e+00> : vector<4x16x16xf32>
    %104 = tpu.matmul %98, %102, %cst_20 {dimension_numbers = #tpu.dot_dimension_numbers<[2], [2], [1], [1], [0, 0, 0, 1, 1, 1], [0], [0]>} : vector<4x16x8xbf16>, vector<4x16x8xbf16>, vector<4x16x16xf32> -> vector<4x16x16xf32>
    "tpu.trace_stop"() : () -> ()
    %105 = arith.addf %103, %104 : vector<4x16x16xf32>
    %106 = vector.shape_cast %8 : vector<1x16xf32> to vector<1x1x16xf32>
    %107 = vector.broadcast %106 : vector<1x1x16xf32> to vector<4x16x16xf32>
    %108 = arith.addf %105, %107 : vector<4x16x16xf32>
    %cst_21 = arith.constant dense<0xFF800000> : vector<4x16xf32>
    %109 = vector.multi_reduction <maximumf>, %108, %cst_21 [2] : vector<4x16x16xf32> to vector<4x16xf32>
    %110 = vector.shape_cast %109 : vector<4x16xf32> to vector<4x16x1xf32>
    %111 = vector.broadcast %110 : vector<4x16x1xf32> to vector<4x16x16xf32>
    %112 = arith.subf %108, %111 : vector<4x16x16xf32>
    %113 = math.exp %112 : vector<4x16x16xf32>
    %cst_22 = arith.constant dense<0.000000e+00> : vector<4x16xf32>
    %114 = vector.multi_reduction <add>, %113, %cst_22 [2] : vector<4x16x16xf32> to vector<4x16xf32>
    %115 = vector.shape_cast %114 : vector<4x16xf32> to vector<4x16x1xf32>
    %116 = tpu.reciprocal %115 {approx = true} : vector<4x16x1xf32> -> vector<4x16x1xf32>
    %117 = vector.broadcast %116 : vector<4x16x1xf32> to vector<4x16x16xf32>
    %118 = arith.mulf %113, %117 : vector<4x16x16xf32>
    %119 = arith.truncf %118 : vector<4x16x16xf32> to vector<4x16x16xbf16>
    "tpu.trace_start"() <{level = 10 : i32, message = "hqk,hkd->hqd"}> : () -> ()
    %cst_23 = arith.constant dense<0.000000e+00> : vector<4x16x8xf32>
    %120 = tpu.matmul %119, %92, %cst_23 {dimension_numbers = #tpu.dot_dimension_numbers<[2], [1], [1], [2], [0, 0, 0, 1, 1, 2], [0], [0]>} : vector<4x16x16xbf16>, vector<4x16x8xbf16>, vector<4x16x8xf32> -> vector<4x16x8xf32>
    "tpu.trace_stop"() : () -> ()
    %121 = vector.extract_strided_slice %120 {offsets = [0, 0, 0], sizes = [1, 16, 8], strides = [1, 1, 1]} : vector<4x16x8xf32> to vector<1x16x8xf32>
    %122 = vector.shape_cast %121 : vector<1x16x8xf32> to vector<16x8xf32>
    %c0_24 = arith.constant 0 : index
    %c0_25 = arith.constant 0 : index
    %123 = vector.load %arg17[%c0_24, %c0_25] : memref<16x32xf32, #tpu.memory_space<vmem>>, vector<16x8xf32>
    tpu.vector_store %arg17[%c0_24, %c0_25], %122 {strides = array<i32>} : memref<16x32xf32, #tpu.memory_space<vmem>>, vector<16x8xf32>,
    %124 = vector.extract_strided_slice %120 {offsets = [1, 0, 0], sizes = [1, 16, 8], strides = [1, 1, 1]} : vector<4x16x8xf32> to vector<1x16x8xf32>
    %125 = vector.shape_cast %124 : vector<1x16x8xf32> to vector<16x8xf32>
    %c0_26 = arith.constant 0 : index
    %c8 = arith.constant 8 : index
    %126 = vector.load %arg17[%c0_26, %c8] : memref<16x32xf32, #tpu.memory_space<vmem>>, vector<16x8xf32>
    tpu.vector_store %arg17[%c0_26, %c8], %125 {strides = array<i32>} : memref<16x32xf32, #tpu.memory_space<vmem>>, vector<16x8xf32>,
    %127 = vector.extract_strided_slice %120 {offsets = [2, 0, 0], sizes = [1, 16, 8], strides = [1, 1, 1]} : vector<4x16x8xf32> to vector<1x16x8xf32>
    %128 = vector.shape_cast %127 : vector<1x16x8xf32> to vector<16x8xf32>
    %c0_27 = arith.constant 0 : index
    %c16 = arith.constant 16 : index
    %129 = vector.load %arg17[%c0_27, %c16] : memref<16x32xf32, #tpu.memory_space<vmem>>, vector<16x8xf32>
    tpu.vector_store %arg17[%c0_27, %c16], %128 {strides = array<i32>} : memref<16x32xf32, #tpu.memory_space<vmem>>, vector<16x8xf32>,
    %130 = vector.extract_strided_slice %120 {offsets = [3, 0, 0], sizes = [1, 16, 8], strides = [1, 1, 1]} : vector<4x16x8xf32> to vector<1x16x8xf32>
    %131 = vector.shape_cast %130 : vector<1x16x8xf32> to vector<16x8xf32>
    %c0_28 = arith.constant 0 : index
    %c24 = arith.constant 24 : index
    %132 = vector.load %arg17[%c0_28, %c24] : memref<16x32xf32, #tpu.memory_space<vmem>>, vector<16x8xf32>
    tpu.vector_store %arg17[%c0_28, %c24], %131 {strides = array<i32>} : memref<16x32xf32, #tpu.memory_space<vmem>>, vector<16x8xf32>,
    %c0_29 = arith.constant 0 : index
    %c0_30 = arith.constant 0 : index
    %133 = vector.load %arg17[%c0_29, %c0_30] : memref<16x32xf32, #tpu.memory_space<vmem>>, vector<16x32xf32>
    %134 = arith.addf %133, %1 : vector<16x32xf32>
    %c0_31 = arith.constant 0 : index
    %c0_32 = arith.constant 0 : index
    %135 = vector.load %arg8[%c0_31, %c0_32] : memref<1x32xf32, #tpu.memory_space<vmem>>, vector<1x32xf32>
    %c0_33 = arith.constant 0 : index
    %c0_34 = arith.constant 0 : index
    %136 = vector.load %arg9[%c0_33, %c0_34] : memref<1x32xf32, #tpu.memory_space<vmem>>, vector<1x32xf32>
    %cst_35 = arith.constant dense<0.000000e+00> : vector<16xf32>
    %137 = vector.multi_reduction <add>, %134, %cst_35 [1] : vector<16x32xf32> to vector<16xf32>
    %138 = vector.shape_cast %137 : vector<16xf32> to vector<16x1xf32>
    %cst_36 = arith.constant 3.200000e+01 : f32
    %139 = vector.broadcast %cst_36 : f32 to vector<16x1xf32>
    %140 = arith.divf %138, %139 : vector<16x1xf32>
    %141 = vector.broadcast %140 : vector<16x1xf32> to vector<16x32xf32>
    %142 = arith.subf %134, %141 : vector<16x32xf32>
    %143 = arith.mulf %142, %142 : vector<16x32xf32>
    %cst_37 = arith.constant dense<0.000000e+00> : vector<16xf32>
    %144 = vector.multi_reduction <add>, %143, %cst_37 [1] : vector<16x32xf32> to vector<16xf32>
    %145 = vector.shape_cast %144 : vector<16xf32> to vector<16x1xf32>
    %cst_38 = arith.constant 3.200000e+01 : f32
    %146 = vector.broadcast %cst_38 : f32 to vector<16x1xf32>
    %147 = arith.divf %145, %146 : vector<16x1xf32>
    %148 = vector.broadcast %140 : vector<16x1xf32> to vector<16x32xf32>
    %149 = arith.subf %134, %148 : vector<16x32xf32>
    %cst_39 = arith.constant 9.99999974E-6 : f32
    %150 = vector.broadcast %cst_39 : f32 to vector<16x1xf32>
    %151 = arith.addf %147, %150 : vector<16x1xf32>
    %152 = math.rsqrt %151 : vector<16x1xf32>
    %153 = vector.broadcast %152 : vector<16x1xf32> to vector<16x32xf32>
    %154 = arith.mulf %149, %153 : vector<16x32xf32>
    %155 = vector.broadcast %135 : vector<1x32xf32> to vector<16x32xf32>
    %156 = arith.mulf %154, %155 : vector<16x32xf32>
    %157 = vector.broadcast %136 : vector<1x32xf32> to vector<16x32xf32>
    %158 = arith.addf %156, %157 : vector<16x32xf32>
    %159 = arith.truncf %158 : vector<16x32xf32> to vector<16x32xbf16>
    %c0_40 = arith.constant 0 : index
    %c0_41 = arith.constant 0 : index
    %160 = vector.load %arg12[%c0_40, %c0_41] : memref<32x64xbf16, #tpu.memory_space<vmem>>, vector<32x64xbf16>
    %cst_42 = arith.constant dense<0.000000e+00> : vector<16x64xf32>
    %161 = tpu.matmul %159, %160, %cst_42 {dimension_numbers = #tpu.dot_dimension_numbers<[1], [0], [0], [1], [0, 0, 1, 1], [], []>} : vector<16x32xbf16>, vector<32x64xbf16>, vector<16x64xf32> -> vector<16x64xf32>
    %c0_43 = arith.constant 0 : index
    %c0_44 = arith.constant 0 : index
    %162 = vector.load %arg13[%c0_43, %c0_44] : memref<1x64xf32, #tpu.memory_space<vmem>>, vector<1x64xf32>
    %163 = vector.broadcast %162 : vector<1x64xf32> to vector<16x64xf32>
    %164 = arith.addf %161, %163 : vector<16x64xf32>
    %cst_45 = arith.constant 0.000000e+00 : f32
    %165 = vector.broadcast %cst_45 : f32 to vector<16x64xf32>
    %166 = arith.maximumf %164, %165 : vector<16x64xf32>
    %167 = arith.truncf %166 : vector<16x64xf32> to vector<16x64xbf16>
    %c0_46 = arith.constant 0 : index
    %c0_47 = arith.constant 0 : index
    %168 = vector.load %arg14[%c0_46, %c0_47] : memref<64x32xbf16, #tpu.memory_space<vmem>>, vector<64x32xbf16>
    %cst_48 = arith.constant dense<0.000000e+00> : vector<16x32xf32>
    %169 = tpu.matmul %167, %168, %cst_48 {dimension_numbers = #tpu.dot_dimension_numbers<[1], [0], [0], [1], [0, 0, 1, 1], [], []>} : vector<16x64xbf16>, vector<64x32xbf16>, vector<16x32xf32> -> vector<16x32xf32>
    %c0_49 = arith.constant 0 : index
    %c0_50 = arith.constant 0 : index
    %170 = vector.load %arg15[%c0_49, %c0_50] : memref<1x32xf32, #tpu.memory_space<vmem>>, vector<1x32xf32>
    %171 = vector.broadcast %170 : vector<1x32xf32> to vector<16x32xf32>
    %172 = arith.addf %169, %171 : vector<16x32xf32>
    %173 = arith.addf %158, %172 : vector<16x32xf32>
    %c0_51 = arith.constant 0 : index
    %c0_52 = arith.constant 0 : index
    %174 = vector.load %arg10[%c0_51, %c0_52] : memref<1x32xf32, #tpu.memory_space<vmem>>, vector<1x32xf32>
    %c0_53 = arith.constant 0 : index
    %c0_54 = arith.constant 0 : index
    %175 = vector.load %arg11[%c0_53, %c0_54] : memref<1x32xf32, #tpu.memory_space<vmem>>, vector<1x32xf32>
    %cst_55 = arith.constant dense<0.000000e+00> : vector<16xf32>
    %176 = vector.multi_reduction <add>, %173, %cst_55 [1] : vector<16x32xf32> to vector<16xf32>
    %177 = vector.shape_cast %176 : vector<16xf32> to vector<16x1xf32>
    %cst_56 = arith.constant 3.200000e+01 : f32
    %178 = vector.broadcast %cst_56 : f32 to vector<16x1xf32>
    %179 = arith.divf %177, %178 : vector<16x1xf32>
    %180 = vector.broadcast %179 : vector<16x1xf32> to vector<16x32xf32>
    %181 = arith.subf %173, %180 : vector<16x32xf32>
    %182 = arith.mulf %181, %181 : vector<16x32xf32>
    %cst_57 = arith.constant dense<0.000000e+00> : vector<16xf32>
    %183 = vector.multi_reduction <add>, %182, %cst_57 [1] : vector<16x32xf32> to vector<16xf32>
    %184 = vector.shape_cast %183 : vector<16xf32> to vector<16x1xf32>
    %cst_58 = arith.constant 3.200000e+01 : f32
    %185 = vector.broadcast %cst_58 : f32 to vector<16x1xf32>
    %186 = arith.divf %184, %185 : vector<16x1xf32>
    %187 = vector.broadcast %179 : vector<16x1xf32> to vector<16x32xf32>
    %188 = arith.subf %173, %187 : vector<16x32xf32>
    %cst_59 = arith.constant 9.99999974E-6 : f32
    %189 = vector.broadcast %cst_59 : f32 to vector<16x1xf32>
    %190 = arith.addf %186, %189 : vector<16x1xf32>
    %191 = math.rsqrt %190 : vector<16x1xf32>
    %192 = vector.broadcast %191 : vector<16x1xf32> to vector<16x32xf32>
    %193 = arith.mulf %188, %192 : vector<16x32xf32>
    %194 = vector.broadcast %174 : vector<1x32xf32> to vector<16x32xf32>
    %195 = arith.mulf %193, %194 : vector<16x32xf32>
    %196 = vector.broadcast %175 : vector<1x32xf32> to vector<16x32xf32>
    %197 = arith.addf %195, %196 : vector<16x32xf32>
    %c0_60 = arith.constant 0 : index
    %c0_61 = arith.constant 0 : index
    %c0_62 = arith.constant 0 : index
    %198 = vector.load %arg16[%c0_60, %c0_61, %c0_62] : memref<1x16x32xf32, #tpu.memory_space<vmem>>, vector<1x16x32xf32>
    %199 = vector.shape_cast %198 : vector<1x16x32xf32> to vector<16x32xf32>
    %200 = vector.shape_cast %197 : vector<16x32xf32> to vector<1x16x32xf32>
    tpu.vector_store %arg16[%c0_60, %c0_61, %c0_62], %200 {strides = array<i32>} : memref<1x16x32xf32, #tpu.memory_space<vmem>>, vector<1x16x32xf32>,
    return
  }
  func.func @transform_0(%arg0: i32) -> (i32, i32, i32) {
    %c0_i32 = arith.constant 0 : i32
    %c0_i32_0 = arith.constant 0 : i32
    %c0_i32_1 = arith.constant 0 : i32
    return %arg0, %c0_i32, %c0_i32_0 : i32, i32, i32
  }
  func.func @transform_1(%arg0: i32) -> (i32, i32, i32) {
    %c0_i32 = arith.constant 0 : i32
    %c0_i32_0 = arith.constant 0 : i32
    %c0_i32_1 = arith.constant 0 : i32
    return %arg0, %c0_i32, %c0_i32_0 : i32, i32, i32
  }
  func.func @transform_2(%arg0: i32) -> (i32, i32) {
    %c0_i32 = arith.constant 0 : i32
    %c0_i32_0 = arith.constant 0 : i32
    %c0_i32_1 = arith.constant 0 : i32
    return %c0_i32, %c0_i32_0 : i32, i32
  }
  func.func @transform_3(%arg0: i32) -> (i32, i32) {
    %c0_i32 = arith.constant 0 : i32
    %c0_i32_0 = arith.constant 0 : i32
    %c0_i32_1 = arith.constant 0 : i32
    return %c0_i32, %c0_i32_0 : i32, i32
  }
  func.func @transform_4(%arg0: i32) -> (i32, i32) {
    %c0_i32 = arith.constant 0 : i32
    %c0_i32_0 = arith.constant 0 : i32
    %c0_i32_1 = arith.constant 0 : i32
    return %c0_i32, %c0_i32_0 : i32, i32
  }
  func.func @transform_5(%arg0: i32) -> (i32, i32) {
    %c0_i32 = arith.constant 0 : i32
    %c0_i32_0 = arith.constant 0 : i32
    %c0_i32_1 = arith.constant 0 : i32
    return %c0_i32, %c0_i32_0 : i32, i32
  }
  func.func @transform_6(%arg0: i32) -> (i32, i32) {
    %c0_i32 = arith.constant 0 : i32
    %c0_i32_0 = arith.constant 0 : i32
    %c0_i32_1 = arith.constant 0 : i32
    return %c0_i32, %c0_i32_0 : i32, i32
  }
  func.func @transform_7(%arg0: i32) -> (i32, i32) {
    %c0_i32 = arith.constant 0 : i32
    %c0_i32_0 = arith.constant 0 : i32
    %c0_i32_1 = arith.constant 0 : i32
    return %c0_i32, %c0_i32_0 : i32, i32
  }
  func.func @transform_8(%arg0: i32) -> (i32, i32) {
    %c0_i32 = arith.constant 0 : i32
    %c0_i32_0 = arith.constant 0 : i32
    %c0_i32_1 = arith.constant 0 : i32
    return %c0_i32, %c0_i32_0 : i32, i32
  }
  func.func @transform_9(%arg0: i32) -> (i32, i32) {
    %c0_i32 = arith.constant 0 : i32
    %c0_i32_0 = arith.constant 0 : i32
    %c0_i32_1 = arith.constant 0 : i32
    return %c0_i32, %c0_i32_0 : i32, i32
  }
  func.func @transform_10(%arg0: i32) -> (i32, i32) {
    %c0_i32 = arith.constant 0 : i32
    %c0_i32_0 = arith.constant 0 : i32
    %c0_i32_1 = arith.constant 0 : i32
    return %c0_i32, %c0_i32_0 : i32, i32
  }
  func.func @transform_11(%arg0: i32) -> (i32, i32) {
    %c0_i32 = arith.constant 0 : i32
    %c0_i32_0 = arith.constant 0 : i32
    %c0_i32_1 = arith.constant 0 : i32
    return %c0_i32, %c0_i32_0 : i32, i32
  }
  func.func @transform_12(%arg0: i32) -> (i32, i32) {
    %c0_i32 = arith.constant 0 : i32
    %c0_i32_0 = arith.constant 0 : i32
    %c0_i32_1 = arith.constant 0 : i32
    return %c0_i32, %c0_i32_0 : i32, i32
  }
  func.func @transform_13(%arg0: i32) -> (i32, i32) {
    %c0_i32 = arith.constant 0 : i32
    %c0_i32_0 = arith.constant 0 : i32
    %c0_i32_1 = arith.constant 0 : i32
    return %c0_i32, %c0_i32_0 : i32, i32
  }
  func.func @transform_14(%arg0: i32) -> (i32, i32) {
    %c0_i32 = arith.constant 0 : i32
    %c0_i32_0 = arith.constant 0 : i32
    %c0_i32_1 = arith.constant 0 : i32
    return %c0_i32, %c0_i32_0 : i32, i32
  }
  func.func @transform_15(%arg0: i32) -> (i32, i32, i32) {
    %c0_i32 = arith.constant 0 : i32
    %c0_i32_0 = arith.constant 0 : i32
    %c0_i32_1 = arith.constant 0 : i32
    return %arg0, %c0_i32, %c0_i32_0 : i32, i32, i32
  }
}

</mosaic_0001>

<bundles_post_ra>
// kernel: tpu_custom_call.1
= control target key start
LH: loop header
LB: loop body
LE: loop exit
PB: predicated region body
PF: predicated region fallthrough
CT: control target
= control target key end

     0   :  { %s3256_s0 = inlined_call_operand.vmem [shape: f32[2,16,32], index: 0, kind: input, shape index: {}]   ;;  %s3257_s1 = inlined_call_operand.vmem [shape: f32[2,1,16], index: 1, kind: input, shape index: {}]   ;;  %s3258_s2 = inlined_call_operand.vmem [shape: bf16[32,32], index: 2, kind: input, shape index: {}]   ;;  %s3259_s3 = inlined_call_operand.vmem [shape: bf16[32,32], index: 3, kind: input, shape index: {}]   ;;  %s3260_s4 = inlined_call_operand.hbm [shape: f32[1,32], index: 4, kind: input, shape index: {}]   ;;  %s3261_s5 = inlined_call_operand.hbm [shape: f32[1,32], index: 5, kind: input, shape index: {}]   ;;  %s3262_s6 = inlined_call_operand.vmem [shape: f32[16,8], index: 6, kind: input, shape index: {}]   ;;  %s3263_s7 = inlined_call_operand.hbm [shape: f32[1,32], index: 7, kind: input, shape index: {}]   ;;  %s3264_s8 = inlined_call_operand.vmem [shape: f32[1,32], index: 8, kind: input, shape index: {}]   ;;  %s3265_s9 = inlined_call_operand.vmem [shape: f32[1,32], index: 9, kind: input, shape index: {}]   ;;  %s3266_s10 = inlined_call_operand.vmem [shape: f32[1,32], index: 10, kind: input, shape index: {}]   ;;  %s3267_s11 = inlined_call_operand.vmem [shape: bf16[32,64], index: 11, kind: input, shape index: {}]   ;;  %s3268_s12 = inlined_call_operand.vmem [shape: f32[1,64], index: 12, kind: input, shape index: {}]   ;;  %s3269_s13 = inlined_call_operand.vmem [shape: bf16[64,32], index: 13, kind: input, shape index: {}]   ;;  %s3270_s14 = inlined_call_operand.vmem [shape: f32[1,32], index: 14, kind: input, shape index: {}]   ;;  %s3271_s15 = inlined_call_operand.hbm [shape: f32[2,16,32], index: 15, kind: output, shape index: {}]  }
   0x1   :  { %3285 = sst [smem:[#allocation20_spill]] %s3266_s10 }
   0x2   :  { %3286 = sst [smem:[#allocation21_spill]] %s3271_s15 }
   0x3   :  { %20 = vsyncpa [#allocation4], 0 }
   0x4   :  { %21 = vsyncpa [#allocation7], 0 }
   0x5   :  { %22 = vsyncpa [#allocation5], 0 }
   0x6   :  { %24 = vsyncpa [#allocation5 + $0x1], 0  ;;  %s2689_s18 = smov 0   ;;  %s2691_s19 = smov 0  }
   0x7   :  { %s2693_s20 = smov 0   ;;  %s2695_s21 = smov 0  }
   0x8 LB: > { %3287 = sst [smem:[#allocation13_spill]] %s2577_s18  ;;  %s2710_s22 = sadd.s32 4294967295, %s2589_s21   ;;  %s2589_s21 = sphi %s2695_s21, %s3313_s21   ;;  %s2585_s20 = sphi %s2693_s20, %s3315_s20   ;;  %s2581_s19 = sphi %s2691_s19, %s3317_s19   ;;  %s2577_s18 = sphi %s2689_s18, %s3316_s18  }
   0x9   : > { %3288 = sst [smem:[#allocation14_spill]] %s2585_s20  ;;  %s2024_s23 = sadd.s32 4294967294, %s2589_s21  }
   0xa   : > { %3289 = sst [smem:[#allocation15_spill]] %s2589_s21  ;;  %s2714_s24 = sadd.s32 1, %s2589_s21  }
   0xb   : > { %3290 = sst [smem:[#allocation16_spill]] %s2714_s24  ;;  %s362_s25 = sadd.s32 1, %s2585_s20 }
   0xc   : > { %s359_s26 = ssub.s32 %s2589_s21, %s2714_s24  ;;  %p372_p0 = scmp.ne.s32.totalorder %s2585_s20, %s2581_s19 }
   0xd   : > { %p360_p1 = scmp.eq.s32.totalorder %s359_s26, 0  ;;  %p373_p2 = scmp.eq.s32.totalorder %s2710_s22, 1 }
   0xe   : > { %p378_p3 = scmp.ne.s32.totalorder %s2581_s19, %s2577_s18  ;;  %p379_p4 = scmp.eq.s32.totalorder %s2024_s23, 1 }
   0xf   : > { %s2725_s27 = scalar_select %p360_p1, %s2585_s20, %s362_s25  }
  0x10   : > { %p2727_p5 = por %p373_p2, %p372_p0  ;;  %p2731_p6 = por %p379_p4, %p378_p3 }
  0x11   : > { %3291 = sst [smem:[#allocation17_spill]] %s2725_s27  ;;  %p2025_p7 = scmp.ge.s32.totalorder %s2589_s21, 1 }
  0x12   : > { %s3292_s28 = scalar_select %p2727_p5, 1, 0 }
  0x13   : > { %s3294_s29 = scalar_select %p2731_p6, 1, 0 }
  0x14   : > { %3293 = sst [smem:[#allocation18_spill]] %s3292_s28  ;;  %p386_p8 = scmp.lt.s32.totalorder %s2589_s21, 3 }
  0x15   : > { %3295 = sst [smem:[#allocation19_spill]] %s3294_s29  ;;  %p3279_p9 = scmp.eq.s32.totalorder %s2710_s22, 0 }
  0x16   : > { %p2738_p10 = pnand %p2025_p7, %p386_p8  ;;  %s2591_s16 = smov [#allocation6]  }
  0x17   : > { %s416_s17 = sshll.u32 %s2591_s16, 4  ;;  %s2592_s23 = smov [#allocation3]   ;;  %s417_s17 = int_to_ptr.vmem [resolvable:$true] %s416_s17 }
  0x18   : > { %s3296_s30 = scalar_select %p2738_p10, 1, 0 }
  0x19   : > { %p2238_p11 = pneg %p2738_p10  ;;  %s405_s25 = sshll.u32 %s2592_s23, 4  ;;  %s2750_s25 = int_to_ptr.vmem [resolvable:$true] %s405_s25 }
  0x1a   : > { %s2593_s27 = smov [#allocation8]   ;;  %s2435_s16 = scalar_lea.hbm %s3261_s5, 16 }
  0x1b   : > { %p2746_p12 = pnand %p3279_p9, %p2238_p11  ;;  %s430_s20 = sshll.u32 %s2593_s27, 4  ;;  %s2752_s20 = int_to_ptr.vmem [resolvable:$true] %s430_s20 }
  0x1c   : > { %p2436_p13 = scmp.ne.s32.totalorder %s3261_s5, %s2435_s16  ;;  %p2442_p3 = scmp.lt.u32.totalorder %s2435_s16, %s3261_s5 }
  0x1d   : > { %p2762_p0 = pneg %p2746_p12 }
  0x1f   : > { %p2438_p1 = pnand %p2762_p0, %p2436_p13 }
  0x21   : > { %p2439_p2 = pneg %p2438_p1 }
  0x23   : > { %p2444_p4 = pnand %p2442_p3, %p2439_p2 }
  0x25   : > { %2447 = shalt.err (!%p2444_p4)
}
  0x26   : > { %s2448_s24 = scalar_lea.vmem %s417_s17, 16  ;;  %s2455_s18 = scalar_lea.vmem %s417_s17, 32 }
  0x27   : > { %p2449_p7 = scmp.ne.s32.totalorder %s417_s17, %s2448_s24  ;;  %p2456_p9 = scmp.lt.s32.totalorder %s417_s17, %s417_s17 }
  0x28   : > { %p2457_p6 = scmp.lt.s32.totalorder %s2455_s18, %s2448_s24 }
  0x29   : > { %p2451_p8 = pnand %p2449_p7, %p2762_p0 }
  0x2a   : > { %p2458_p5 = por %p2457_p6, %p2456_p9 }
  0x2b   : > { %p2452_p11 = pneg %p2451_p8 }
  0x2d   : > { %p2459_p10 = pnand %p2458_p5, %p2452_p11 }
  0x2f   : > { %2462 = shalt.err (!%p2459_p10)
}
  0x30   : > { %2244 = dma.hbm_to_vmem [thread:$0]  (!%p2746_p12), %s3261_s5, 16, %s417_s17, [#allocation7]  }
  0x31   : > { %s2463_s27 = scalar_lea.hbm %s3260_s4, 16 }
  0x32   : > { %p2464_p13 = scmp.ne.s32.totalorder %s3260_s4, %s2463_s27  ;;  %p2470_p5 = scmp.lt.u32.totalorder %s2463_s27, %s3260_s4 }
  0x34   : > { %p2466_p1 = pnand %p2464_p13, %p2762_p0 }
  0x36   : > { %p2467_p6 = pneg %p2466_p1 }
  0x38   : > { %p2472_p9 = pnand %p2470_p5, %p2467_p6 }
  0x3a   : > { %2475 = shalt.err (!%p2472_p9)
}
  0x3b   : > { %s2476_s17 = scalar_lea.vmem %s2750_s25, 16  ;;  %s2483_s10 = scalar_lea.vmem %s2750_s25, 32 }
  0x3c   : > { %p2477_p10 = scmp.ne.s32.totalorder %s2750_s25, %s2476_s17  ;;  %p2484_p4 = scmp.lt.s32.totalorder %s2750_s25, %s2750_s25 }
  0x3d   : > { %p2485_p7 = scmp.lt.s32.totalorder %s2483_s10, %s2476_s17 }
  0x3e   : > { %p2479_p2 = pnand %p2477_p10, %p2762_p0 }
  0x3f   : > { %p2486_p8 = por %p2485_p7, %p2484_p4 }
  0x40   : > { %p2480_p3 = pneg %p2479_p2 }
  0x42   : > { %p2487_p11 = pnand %p2486_p8, %p2480_p3 }
  0x44   : > { %2490 = shalt.err (!%p2487_p11)
}
  0x45   : > { %2241 = dma.hbm_to_vmem [thread:$0]  (!%p2746_p12), %s3260_s4, 16, %s2750_s25, [#allocation4]  }
  0x46   : > { %s2491_s16 = scalar_lea.hbm %s3263_s7, 16 }
  0x47   : > { %p2492_p13 = scmp.ne.s32.totalorder %s3263_s7, %s2491_s16  ;;  %p2498_p5 = scmp.lt.u32.totalorder %s2491_s16, %s3263_s7 }
  0x49   : > { %p2494_p1 = pnand %p2492_p13, %p2762_p0 }
  0x4b   : > { %p2495_p6 = pneg %p2494_p1 }
  0x4d   : > { %p2500_p9 = pnand %p2498_p5, %p2495_p6 }
  0x4f   : > { %2503 = shalt.err (!%p2500_p9)
}
  0x50   : > { %s2504_s25 = scalar_lea.vmem %s2752_s20, 16  ;;  %s2511_s10 = scalar_lea.vmem %s2752_s20, 32 }
  0x51   : > { %p2505_p10 = scmp.ne.s32.totalorder %s2752_s20, %s2504_s25  ;;  %p2512_p4 = scmp.lt.s32.totalorder %s2752_s20, %s2752_s20 }
  0x52   : > { %p2513_p7 = scmp.lt.s32.totalorder %s2511_s10, %s2504_s25 }
  0x53   : > { %p2507_p2 = pnand %p2505_p10, %p2762_p0 }
  0x54   : > { %p2514_p8 = por %p2513_p7, %p2512_p4 }
  0x55   : > { %p2508_p3 = pneg %p2507_p2 }
  0x57   : > { %p2515_p11 = pnand %p2514_p8, %p2508_p3 }
  0x59   : > { %2518 = shalt.err (!%p2515_p11)
}
  0x5a   : > { %2247 = dma.hbm_to_vmem [thread:$0]  (!%p2746_p12), %s3263_s7, 16, %s2752_s20, [#allocation7]  }
  0x5b   : > { %p3299_p13 = scmp.ne.s32.totalorder %s3296_s30, 0 }
  0x5c   : > { %p3300_p0 = scmp.eq.s32.totalorder (!%p3299_p13), %s2710_s22, 0 }
  0x5d   : > { %478 = sbr.rel (%p3299_p13) target bundleno = 2564 (0xa04), region = 80 }
  0x64   : > { %2564 = dma.done.wait (%p3300_p0), [#allocation4], 16   ;;  %p3301_p1 = pmov %p3300_p0 }
  0x65   : > { %p3302_p6 = pmov %p3300_p0 }
  0x66   : > { %2566 = vsyncadd (%p3301_p1), [#allocation4], 4294967280 }
  0x67   : > { %2568 = dma.done.wait (%p3302_p6), [#allocation7], 32   ;;  %p3303_p5 = pmov %p3300_p0 }
  0x68   : > { %p537_p9 = scmp.lt.s32.totalorder %s2710_s22, 1  ;;  %v2594_v0 = vmov 0.0   ;;  %vm2595_vm0 = vmmov 0   ;;  %v2383_v1 = vld [vmem:[%s3258_s2] sm:$0xff]   ;;  %v2384_v2 = vld [vmem:[%s3258_s2 + $0x8] sm:$0xff]   ;;  %vm568_vm1 = vcmask 261120  }
  0x69   : > { %2570 = vsyncadd (%p3303_p5), [#allocation7], 4294967264  ;;  %2116 = vmatprep.subr.bf16.mxu0 %v2594_v0  ;;  %2120 = vmatprep.mubr.msk.bf16.mxu0 %vm2595_vm0, %v2594_v0  ;;  %v2868_v5 = vld [vmem:[%s3262_s6] sm:$0xff]  ;;  %v2873_v6 = vld [vmem:[%s3262_s6 + $0x8] sm:$0xff]  ;;  %s2596_s28 = smov 12   ;;  %s3284_s21 = smov 8  }
  0x6a   : > { %s2841_s20 = scalar_select %p537_p9, %s2710_s22, 1  ;;  %2124 = vmatprep.subr.bf16.mxu1 %v2594_v0  ;;  %2128 = vmatprep.mubr.msk.bf16.mxu1 %vm2595_vm0, %v2594_v0  ;;  %v2044_v11 = vld [vmem:[#allocation6] ss:$0 sm:$0xff]  ;;  %v2043_v14 = vld [vmem:[#allocation3] ss:$0 sm:$0xff]  ;;  %v970_v44 = vpack.c.bf16 %v2873_v6, %v2868_v5  ;;  %vm971_vm2 = vcmask 64512  }
  0x6b   : > { %2117 = vmatpush3.bf16.msra.mxu0 %v2383_v1  ;;  %733 = vrot.lane.b32.xlu0 %v2868_v5, %s2596_s28  ;;  %s2599_s26 = smov 16   ;;  %s2600_s23 = smov 28   ;;  %v2385_v49 = vld [vmem:[%s3259_s3] sm:$0xff]   ;;  %v2386_v51 = vld [vmem:[%s3259_s3 + $0x8] sm:$0xff]   ;;  %vm730_vm3 = vcmask 31744   ;;  %vm1352_vm5 = vcmask 130048  }
  0x6c   : > { %s2076_s30 = sshll.u32 %s2841_s20, 4  ;;  %2118 = vmatprep.subr.bf16.mxu0 %v2594_v0  ;;  %751 = vrot.lane.b32.xlu1 %v2868_v5, %s3284_s21  ;;  %s2601_s15 = smov 24   ;;  %v2977_v45 = vsel %vm971_vm2, %v970_v44, 0  ;;  %vm1631_vm6 = vcmask 130112   ;;  %vm1642_vm7 = vcmask 195712   ;;  %vm1653_vm8 = vcmask 261312  }
  0x6d   : > { %s2850_s29 = scalar_lea.vmem %s3256_s0, %s2076_s30  ;;  %s2598_s30 = smov 20   ;;  %2125 = vmatpush3.bf16.msra.mxu1 %v2385_v49  ;;  %vm1815_vm9 = vcmask 523264  }
  0x6e   : > { %v2859_v3 = vld [vmem:[%s2850_s29] sm:$0xff]  ;;  %v2862_v4 = vld [vmem:[%s2850_s29 + $0x8] sm:$0xff]  ;;  %s2602_s16 = smov 4   ;;  %s2603_s27 = smov 124   ;;  %2126 = vmatprep.subr.bf16.mxu1 %v2594_v0 }
  0x6f   : > { %v2880_v7 = vpack.c.bf16 %v2862_v4, %v2859_v3  ;;  %2119 = vmatpush3.bf16.msra.mxu0 %v2384_v2  ;;  %735 = vrot.lane.b32.xlu0 %v2873_v6, %s2596_s28  ;;  %s2604_s10 = smov 120   ;;  %s2605_s28 = smov 112  }
  0x70   : > { %2132 = vmatprep.subr.bf16.mxu0 %v2594_v0  ;;  %753 = vrot.lane.b32.xlu1 %v2873_v6, %s3284_s21  ;;  %s534_s24 = sand.u32 1, %s2581_s19   ;;  %s2607_s17 = smov [#allocation9]  }
  0x71   : > { %2127 = vmatpush3.bf16.msra.mxu1 %v2386_v51  ;;  %s2034_s18 = sshll.u32 %s534_s24, 4  ;;  %s2523_s25 = sshll.u32 %s2607_s17, 4  ;;  %s2524_s25 = int_to_ptr.vmem [resolvable:$false] %s2523_s25 }
  0x72   : > { %2121 = vmatmul.mubr.msk.bf16.vlgmr.msra.gmra.mrb[0].mxu0 %vm568_vm1, %v2880_v7  ;;  %2138 = vmatprep.subr.bf16.mxu1 %v2594_v0 }
  0x73   : > { %2134 = vmatprep.mubr.msk.bf16.mxu0 %vm2595_vm0, %v2594_v0  ;;  %787 = vrot.lane.b32.xlu0 %v2868_v5, %s2598_s30 }
  0x74   : > { %789 = vrot.lane.b32.xlu1 %v2873_v6, %s2598_s30  ;;  %2129 = vmatmul.mubr.msk.bf16.vlgmr.msra.gmra.mrb[0].mxu1 %vm568_vm1, %v2880_v7  ;;  %s2606_s30 = smov 104  }
  0x75   : > { %2140 = vmatprep.mubr.msk.bf16.mxu1 %vm2595_vm0, %v2594_v0 }
  0x77   : > { %805 = vrot.lane.b32.xlu0 %v2868_v5, %s2599_s26 }
  0x78   : > { %807 = vrot.lane.b32.xlu1 %v2873_v6, %s2599_s26  ;;  %2133 = vmatpush3.bf16.xpose.msra.mxu0 %v2977_v45 }
  0x79   : > { %2144 = vmatprep.subr.bf16.mxu0 %v2594_v0 }
  0x7a   : > { %2139 = vmatpush3.bf16.xpose.msra.mxu1 %v2977_v45 }
  0x7b   : > { %841 = vrot.lane.b32.xlu0 %v2868_v5, %s2600_s23  ;;  %2150 = vmatprep.subr.bf16.mxu1 %v2594_v0 }
  0x7c   : > { %843 = vrot.lane.b32.xlu1 %v2873_v6, %s2600_s23  ;;  %s3305_s23 = sld [smem:[#allocation18_spill]] }
  0x7f   : > { %859 = vrot.lane.b32.xlu0 %v2868_v5, %s2601_s15 }
  0x80   : > { %861 = vrot.lane.b32.xlu1 %v2873_v6, %s2601_s15 }
  0x82   : > { %p3307_p10 = scmp.ne.s32.totalorder %s3305_s23, 0 }
  0x83   : > { %700 = vrot.lane.b32.xlu0 %v2868_v5, %s2602_s16 }
  0x84   : > { %702 = vrot.lane.b32.xlu1 %v2873_v6, %s2602_s16 }
  0xdd   : > { %v734_v8 = vpop.permute.xlu0 %733 }
  0xde   : > { %v752_v9 = vpop.permute.xlu1 %751 }
  0xe1   : > { %v736_v10 = vpop.permute.xlu0 %735 }
  0xe2   : > { %v754_v12 = vpop.permute.xlu1 %753 }
  0xe5   : > { %v788_v23 = vpop.permute.xlu0 %787 }
  0xe6   : > { %v790_v26 = vpop.permute.xlu1 %789 }
  0xe9   : > { %v806_v30 = vpop.permute.xlu0 %805 }
  0xea   : > { %v808_v32 = vpop.permute.xlu1 %807 }
  0xed   : > { %v842_v35 = vpop.permute.xlu0 %841 }
  0xee   : > { %v844_v37 = vpop.permute.xlu1 %843 }
  0xf1   : > { %v860_v40 = vpop.permute.xlu0 %859 }
  0xf2   : > { %v862_v42 = vpop.permute.xlu1 %861 }
  0xf5   : > { %v701_v46 = vpop.permute.xlu0 %700 }
  0xf6   : > { %v703_v47 = vpop.permute.xlu1 %702 }
 0x145   : > { %v606_v13 = vpop.f32.mrb[0].mxu0 }
 0x146   : > { %v2906_v15 = vadd.f32 %v2044_v11, %v606_v13  ;;  %v2122_v16 = vpop.f32.mrb[1].mxu0  ;;  %v2908_v18 = vadd.f32 %v2043_v14, %v606_v13 }
 0x147   : > { %v609_v17 = vpop.f32.mrb[2].mxu0 }
 0x148   : > { %v2910_v19 = vadd.f32 %v2043_v14, %v609_v17  ;;  %v2912_v20 = vadd.f32 %v2044_v11, %v609_v17  ;;  %v2123_v21 = vpop.f32.mrb[3].mxu0  ;;  %v2915_v22 = vmul.f32 %v734_v8, %v2906_v15  ;;  %v2927_v27 = vmul.f32 %v752_v9, %v2906_v15 }
 0x149   : > { %v2941_v31 = vmul.f32 %v788_v23, %v2906_v15  ;;  %v2951_v34 = vmul.f32 %v806_v30, %v2906_v15  ;;  %v847_v38 = vmul.f32 %v842_v35, %v2906_v15  ;;  %v2965_v41 = vmul.f32 %v860_v40, %v2906_v15 }
 0x14a   : > { %v915_v24 = vpack.c.bf16 %v2910_v19, %v2908_v18  ;;  %743 = vrot.lane.b32.xlu0 %v2915_v22, %s2603_s27  ;;  %v2922_v25 = vmul.f32 %v736_v10, %v2912_v20  ;;  %v2931_v28 = vpack.i.bf16 %v2910_v19, %v2908_v18  ;;  %v2936_v29 = vmul.f32 %v754_v12, %v2912_v20 }
 0x14b   : > { %v2946_v33 = vmul.f32 %v790_v26, %v2912_v20  ;;  %v2956_v36 = vmul.f32 %v808_v32, %v2912_v20  ;;  %v848_v39 = vmul.f32 %v844_v37, %v2912_v20  ;;  %v2970_v43 = vmul.f32 %v862_v42, %v2912_v20 }
 0x14c   : > { %745 = vrot.lane.b32.xlu1 %v2922_v25, %s2603_s27  ;;  %v706_v48 = vmul.f32 %v701_v46, %v2906_v15  ;;  %v707_v50 = vmul.f32 %v703_v47, %v2912_v20  ;;  %v2998_v52 = vmul.f32 %v2868_v5, %v2906_v15  ;;  %v3004_v53 = vmul.f32 %v2873_v6, %v2912_v20 }
 0x14e   : > { %761 = vrot.lane.b32.xlu0 %v2927_v27, %s2602_s16 }
 0x150   : > { %763 = vrot.lane.b32.xlu1 %v2936_v29, %s2602_s16 }
 0x152   : > { %797 = vrot.lane.b32.xlu0 %v2941_v31, %s2603_s27 }
 0x154   : > { %799 = vrot.lane.b32.xlu1 %v2946_v33, %s2603_s27 }
 0x156   : > { %815 = vrot.lane.b32.xlu0 %v2951_v34, %s2602_s16 }
 0x158   : > { %817 = vrot.lane.b32.xlu1 %v2956_v36, %s2602_s16 }
 0x15a   : > { %851 = vrot.lane.b32.xlu0 %v847_v38, %s2603_s27 }
 0x15c   : > { %853 = vrot.lane.b32.xlu1 %v848_v39, %s2603_s27 }
 0x15e   : > { %869 = vrot.lane.b32.xlu0 %v2965_v41, %s2602_s16 }
 0x160   : > { %871 = vrot.lane.b32.xlu1 %v2970_v43, %s2602_s16 }
 0x162   : > { %692 = vrot.lane.b32.xlu0 %v2868_v5, %s2603_s27 }
 0x164   : > { %694 = vrot.lane.b32.xlu1 %v2873_v6, %s2603_s27 }
 0x166   : > { %710 = vrot.lane.b32.xlu0 %v706_v48, %s2603_s27 }
 0x168   : > { %712 = vrot.lane.b32.xlu1 %v707_v50, %s2603_s27  ;;  %s544_s27 = scalar_lea.vmem %s3257_s1, %s2841_s20 }
 0x16a   : > { %722 = vrot.lane.b32.xlu0 %v2998_v52, %s2602_s16 }
 0x16c   : > { %724 = vrot.lane.b32.xlu1 %v3004_v53, %s2602_s16  ;;  %s2077_s16 = sshll.u32 %s2710_s22, 8  ;;  %s3214_s22 = scalar_lea.sflag [#allocation5], %s534_s24 }
 0x1bc   : > { %v744_v54 = vpop.permute.xlu0 %743 }
 0x1bd   : > { %v749_v56 = vadd.f32 %v744_v54, %v706_v48 }
 0x1be   : > { %v746_v55 = vpop.permute.xlu1 %745 }
 0x1bf   : > { %v750_v57 = vadd.f32 %v746_v55, %v707_v50 }
 0x1c0   : > { %v762_v58 = vpop.permute.xlu0 %761 }
 0x1c1   : > { %v2308_v59 = vpack.i.bf16 %v750_v57, %v749_v56  ;;  %v767_v61 = vsub.f32 %v2927_v27, %v762_v58 }
 0x1c2   : > { %v764_v60 = vpop.permute.xlu1 %763 }
 0x1c3   : > { %v768_v62 = vsub.f32 %v2936_v29, %v764_v60  ;;  %2309 = vrot.lane.b32.xlu0 %v2308_v59, %s2604_s10  ;;  %v2338_v29 = vpack.i.bf16 %v2862_v4, %v2859_v3 }
 0x1c4   : > { %v798_v63 = vpop.permute.xlu0 %797 }
 0x1c5   : > { %v2313_v1 = vpack.i.bf16 %v768_v62, %v767_v61  ;;  %v803_v5 = vadd.f32 %v798_v63, %v2915_v22 }
 0x1c6   : > { %v800_v2 = vpop.permute.xlu1 %799 }
 0x1c7   : > { %v804_v6 = vadd.f32 %v800_v2, %v2922_v25  ;;  %2314 = vrot.lane.b32.xlu1 %v2313_v1, %s2604_s10  ;;  %v1154_v2 = vsel %vm971_vm2, %v2880_v7, 0 }
 0x1c8   : > { %v816_v8 = vpop.permute.xlu0 %815 }
 0x1c9   : > { %v2318_v9 = vpack.i.bf16 %v804_v6, %v803_v5  ;;  %v821_v11 = vsub.f32 %v2951_v34, %v816_v8 }
 0x1ca   : > { %v818_v10 = vpop.permute.xlu1 %817 }
 0x1cb   : > { %v822_v12 = vsub.f32 %v2956_v36, %v818_v10  ;;  %2319 = vrot.lane.b32.xlu0 %v2318_v9, %s2605_s28 }
 0x1cc   : > { %v852_v13 = vpop.permute.xlu0 %851 }
 0x1cd   : > { %v2323_v14 = vpack.i.bf16 %v822_v12, %v821_v11  ;;  %v857_v17 = vadd.f32 %v852_v13, %v2941_v31 }
 0x1ce   : > { %v854_v16 = vpop.permute.xlu1 %853 }
 0x1cf   : > { %v858_v21 = vadd.f32 %v854_v16, %v2946_v33  ;;  %2324 = vrot.lane.b32.xlu1 %v2323_v14, %s2605_s28 }
 0x1d0   : > { %v870_v22 = vpop.permute.xlu0 %869 }
 0x1d1   : > { %v2328_v23 = vpack.i.bf16 %v858_v21, %v857_v17  ;;  %v875_v26 = vsub.f32 %v2965_v41, %v870_v22 }
 0x1d2   : > { %v872_v25 = vpop.permute.xlu1 %871 }
 0x1d3   : > { %v876_v27 = vsub.f32 %v2970_v43, %v872_v25  ;;  %2329 = vrot.lane.b32.xlu0 %v2328_v23, %s2606_s30 }
 0x1d4   : > { %v693_v30 = vpop.permute.xlu0 %692 }
 0x1d5   : > { %v2333_v32 = vpack.i.bf16 %v876_v27, %v875_v26  ;;  %v698_v36 = vmul.f32 %v693_v30, %v2906_v15 }
 0x1d6   : > { %v695_v31 = vpop.permute.xlu1 %694 }
 0x1d7   : > { %2334 = vrot.lane.b32.xlu1 %v2333_v32, %s2606_s30  ;;  %2339 = vrot.lane.b32.xlu0 %v2338_v29, %s2604_s10  ;;  %v699_v37 = vmul.f32 %v695_v31, %v2912_v20 }
 0x1d8   : > { %v711_v33 = vpop.permute.xlu0 %710 }
 0x1d9   : > { %v716_v38 = vadd.f32 %v711_v33, %v698_v36 }
 0x1da   : > { %v713_v34 = vpop.permute.xlu1 %712 }
 0x1db   : > { %2344 = vrot.lane.b32.xlu1 %v2338_v29, %s2605_s28  ;;  %2349 = vrot.lane.b32.xlu0 %v2931_v28, %s2604_s10  ;;  %v717_v39 = vadd.f32 %v713_v34, %v699_v37 }
 0x1dc   : > { %v723_v35 = vpop.permute.xlu0 %722 }
 0x1dd   : > { %v728_v3 = vsub.f32 %v2998_v52, %v723_v35  ;;  %v3059_v52 = vpop.f32.mrb[0].mxu1 }
 0x1de   : > { %v725_v4 = vpop.permute.xlu1 %724  ;;  %v2130_v54 = vpop.f32.mrb[1].mxu1 }
 0x1df   : > { %v729_v40 = vsub.f32 %v3004_v53, %v725_v4  ;;  %2354 = vrot.lane.b32.xlu1 %v2338_v29, %s2606_s30  ;;  %2359 = vrot.lane.b32.xlu0 %v2931_v28, %s2605_s28  ;;  %v731_v41 = vsel %vm730_vm3, %v716_v38, %v728_v3  ;;  %v3062_v59 = vpop.f32.mrb[2].mxu1 }
 0x1e0   : > { %v962_v60 = vpack.c.bf16 %v3062_v59, %v3059_v52  ;;  %v2131_v61 = vpop.f32.mrb[3].mxu1 }
 0x1e1   : > { %v732_v42 = vsel %vm730_vm3, %v717_v39, %v729_v40 }
 0x1e2   : > { %v966_v15 = vpack.c.bf16 %v732_v42, %v731_v41  ;;  %v3103_v41 = vpack.i.bf16 %v3062_v59, %v3059_v52 }
 0x1e3   : > { %2364 = vrot.lane.b32.xlu1 %v2931_v28, %s2606_s30 }
 0x1e4   : > { %2135 = vmatmul.mubr.msk.bf16.vlgmr.msra.gmra.mrb[4].mxu0 %vm971_vm2, %v966_v15 }
 0x1e5   : > { %2145 = vmatpush3.bf16.xpose.msra.mxu0 %v2977_v45  ;;  %2146 = vmatprep.mubr.msk.bf16.mxu0 %vm2595_vm0, %v2594_v0 }
 0x1e6   : > { %2156 = vmatprep.subr.bf16.mxu0 %v2594_v0 }
 0x235   : > { %v2310_v20 = vpop.permute.xlu0 %2309 }
 0x236   : > { %v2312_v44 = vunpack.i.h.bf16 %v2310_v20  ;;  %v2311_v46 = vunpack.i.l.bf16 %v2310_v20 }
 0x239   : > { %v2315_v43 = vpop.permute.xlu1 %2314 }
 0x23a   : > { %v2317_v47 = vunpack.i.h.bf16 %v2315_v43  ;;  %v2316_v48 = vunpack.i.l.bf16 %v2315_v43 }
 0x23c   : > { %v785_v49 = vsel %vm730_vm3, %v2311_v46, %v2316_v48  ;;  %v786_v50 = vsel %vm730_vm3, %v2312_v44, %v2317_v47  ;;  %v1339_v48 = vlaneseq }
 0x23d   : > { %v967_v28 = vpack.c.bf16 %v786_v50, %v785_v49  ;;  %v2320_v51 = vpop.permute.xlu0 %2319  ;;  %v548_v50 = vld [vmem:[%s544_s27] sm:$0x1]  ;;  %s536_s27 = scalar_lea.vmem [#allocation9], %s2034_s18 }
 0x23e   : > { %v2322_v55 = vunpack.i.h.bf16 %v2320_v51  ;;  %v2321_v56 = vunpack.i.l.bf16 %v2320_v51  ;;  %vm549_vm4 = vcmp.eq.f32.partialorder %v548_v50, 0.0  ;;  %s1922_s20 = sshll.u32 %s536_s27, 4  ;;  %s3211_s20 = int_to_ptr.vmem [resolvable:$true] %s1922_s20 }
 0x23f   : > { %2141 = vmatmul.mubr.msk.bf16.vlgmr.msra.gmra.mrb[4].mxu1 %vm971_vm2, %v967_v28  ;;  %v1340_v28 = vshrl.u32 %v1339_v48, 7  ;;  %s2519_s18 = scalar_lea.vmem %s3211_s20, 256  ;;  %p2526_p4 = scmp.lt.s32.totalorder %s3211_s20, %s2524_s25 }
 0x240   : > { %2151 = vmatpush3.bf16.xpose.msra.mxu1 %v2977_v45  ;;  %2152 = vmatprep.mubr.msk.bf16.mxu1 %vm2595_vm0, %v2594_v0  ;;  %p2520_p12 = scmp.ne.s32.totalorder %s3211_s20, %s2519_s18 }
 0x241   : > { %v2325_v53 = vpop.permute.xlu1 %2324  ;;  %2162 = vmatprep.subr.bf16.mxu1 %v2594_v0  ;;  %v1341_v54 = vsub.s32 0, %v1340_v28 }
 0x242   : > { %v2327_v57 = vunpack.i.h.bf16 %v2325_v53  ;;  %v2326_v58 = vunpack.i.l.bf16 %v2325_v53  ;;  %p2521_p2 = pnand %p2520_p12, %p3307_p10 }
 0x244   : > { %v839_v45 = vsel %vm730_vm3, %v2321_v56, %v2326_v58  ;;  %v840_v62 = vsel %vm730_vm3, %v2322_v55, %v2327_v57  ;;  %v550_v56 = vsel %vm549_vm4, -1e+30, %v2594_v0  ;;  %p2522_p3 = pneg %p2521_p2 }
 0x245   : > { %v968_v63 = vpack.c.bf16 %v840_v62, %v839_v45  ;;  %v2330_v1 = vpop.permute.xlu0 %2329  ;;  %v1342_v57 = vrot.slane %v550_v56, %v1341_v54 }
 0x246   : > { %v2332_v5 = vunpack.i.h.bf16 %v2330_v1  ;;  %v2331_v6 = vunpack.i.l.bf16 %v2330_v1 }
 0x247   : > { %2147 = vmatmul.mubr.msk.bf16.vlgmr.msra.gmra.mrb[8].mxu0 %vm971_vm2, %v968_v63 }
 0x248   : > { %2157 = vmatpush3.bf16.xpose.msra.mxu0 %v1154_v2  ;;  %2158 = vmatprep.mubr.msk.bf16.mxu0 %vm2595_vm0, %v2594_v0 }
 0x249   : > { %v2335_v8 = vpop.permute.xlu1 %2334  ;;  %v2340_v9 = vpop.permute.xlu0 %2339  ;;  %2168 = vmatprep.subr.bf16.mxu0 %v2594_v0 }
 0x24a   : > { %v2337_v10 = vunpack.i.h.bf16 %v2335_v8  ;;  %v2336_v11 = vunpack.i.l.bf16 %v2335_v8  ;;  %v2342_v12 = vunpack.i.h.bf16 %v2340_v9  ;;  %v2341_v13 = vunpack.i.l.bf16 %v2340_v9 }
 0x24c   : > { %v893_v14 = vsel %vm730_vm3, %v2331_v6, %v2336_v11  ;;  %v894_v7 = vsel %vm730_vm3, %v2332_v5, %v2337_v10  ;;  %v939_v16 = vpack.c.bf16 %v2342_v12, %v2341_v13 }
 0x24d   : > { %v969_v17 = vpack.c.bf16 %v894_v7, %v893_v14  ;;  %v2345_v21 = vpop.permute.xlu1 %2344  ;;  %v2350_v22 = vpop.permute.xlu0 %2349 }
 0x24e   : > { %v2347_v23 = vunpack.i.h.bf16 %v2345_v21  ;;  %v2346_v25 = vunpack.i.l.bf16 %v2345_v21  ;;  %v1201_v26 = vsel %vm971_vm2, %v939_v16, 0  ;;  %v2352_v29 = vunpack.i.h.bf16 %v2350_v22 }
 0x24f   : > { %2153 = vmatmul.mubr.msk.bf16.vlgmr.msra.gmra.mrb[8].mxu1 %vm971_vm2, %v969_v17  ;;  %2159 = vmatmul.mubr.msk.bf16.vlgmr.msra.gmra.mrb[12].mxu0 %vm971_vm2, %v915_v24  ;;  %v2351_v30 = vunpack.i.l.bf16 %v2350_v22 }
 0x250   : > { %v940_v27 = vpack.c.bf16 %v2347_v23, %v2346_v25  ;;  %2163 = vmatpush3.bf16.xpose.msra.mxu1 %v1201_v26  ;;  %2164 = vmatprep.mubr.msk.bf16.mxu1 %vm2595_vm0, %v2594_v0 }
 0x251   : > { %v2355_v32 = vpop.permute.xlu1 %2354  ;;  %2174 = vmatprep.subr.bf16.mxu1 %v2594_v0  ;;  %2170 = vmatprep.mubr.msk.bf16.mxu0 %vm2595_vm0, %v2594_v0  ;;  %v2360_v18 = vpop.permute.xlu0 %2359  ;;  %v916_v34 = vpack.c.bf16 %v2352_v29, %v2351_v30 }
 0x252   : > { %v2357_v31 = vunpack.i.h.bf16 %v2355_v32  ;;  %v2356_v33 = vunpack.i.l.bf16 %v2355_v32  ;;  %v1248_v19 = vsel %vm971_vm2, %v940_v27, 0  ;;  %v2362_v35 = vunpack.i.h.bf16 %v2360_v18 }
 0x253   : > { %2169 = vmatpush3.bf16.xpose.msra.mxu0 %v1248_v19  ;;  %v2361_v36 = vunpack.i.l.bf16 %v2360_v18 }
 0x254   : > { %v941_v24 = vpack.c.bf16 %v2357_v31, %v2356_v33  ;;  %2180 = vmatprep.subr.bf16.mxu0 %v2594_v0 }
 0x255   : > { %v2365_v37 = vpop.permute.xlu1 %2364  ;;  %v917_v4 = vpack.c.bf16 %v2362_v35, %v2361_v36 }
 0x256   : > { %v1295_v3 = vsel %vm971_vm2, %v941_v24, 0  ;;  %v2367_v38 = vunpack.i.h.bf16 %v2365_v37  ;;  %v2366_v39 = vunpack.i.l.bf16 %v2365_v37 }
 0x257   : > { %2165 = vmatmul.mubr.msk.bf16.vlgmr.msra.gmra.mrb[12].mxu1 %vm971_vm2, %v916_v34 }
 0x258   : > { %2175 = vmatpush3.bf16.xpose.msra.mxu1 %v1295_v3  ;;  %2176 = vmatprep.mubr.msk.bf16.mxu1 %vm2595_vm0, %v2594_v0  ;;  %v918_v40 = vpack.c.bf16 %v2367_v38, %v2366_v39 }
 0x259   : > { %2186 = vmatprep.subr.bf16.mxu1 %v2594_v0 }
 0x25a   : > { %2171 = vmatmul.mubr.msk.bf16.vlgmr.msra.gmra.mrb[16].mxu0 %vm971_vm2, %v917_v4 }
 0x25b   : > { %2181 = vmatpush3.bf16.msra.mxu0 %v962_v60  ;;  %2182 = vmatprep.mubr.msk.bf16.mxu0 %vm2595_vm0, %v2594_v0 }
 0x25c   : > { %2192 = vmatprep.subr.bf16.mxu0 %v2594_v0 }
 0x25f   : > { %2177 = vmatmul.mubr.msk.bf16.vlgmr.msra.gmra.mrb[16].mxu1 %vm971_vm2, %v918_v40 }
 0x260   : > { %2188 = vmatprep.mubr.msk.bf16.mxu1 %vm2595_vm0, %v2594_v0 }
 0x2b7   : > { %v1012_v42 = vpop.f32.mrb[4].mxu0 }
 0x2b8   : > { %v2136_v15 = vpop.f32.mrb[5].mxu0 }
 0x2b9   : > { %v1015_v20 = vpop.f32.mrb[6].mxu0 }
 0x2ba   : > { %v2137_v43 = vpop.f32.mrb[7].mxu0 }
 0x312   : > { %v1056_v44 = vpop.f32.mrb[4].mxu1 }
 0x313   : > { %v2142_v46 = vpop.f32.mrb[5].mxu1 }
 0x314   : > { %v1059_v47 = vpop.f32.mrb[6].mxu1 }
 0x315   : > { %v2143_v49 = vpop.f32.mrb[7].mxu1 }
 0x31a   : > { %v1100_v51 = vpop.f32.mrb[8].mxu0 }
 0x31b   : > { %v2148_v53 = vpop.f32.mrb[9].mxu0 }
 0x31c   : > { %v1103_v52 = vpop.f32.mrb[10].mxu0 }
 0x31d   : > { %v2149_v55 = vpop.f32.mrb[11].mxu0 }
 0x322   : > { %v1144_v58 = vpop.f32.mrb[8].mxu1  ;;  %v1190_v59 = vpop.f32.mrb[12].mxu0 }
 0x323   : > { %v1191_v60 = vadd.f32 %v1190_v59, %v1012_v42  ;;  %v2154_v61 = vpop.f32.mrb[9].mxu1  ;;  %v2160_v45 = vpop.f32.mrb[13].mxu0 }
 0x324   : > { %v1147_v62 = vpop.f32.mrb[10].mxu1  ;;  %v1193_v63 = vpop.f32.mrb[14].mxu0 }
 0x325   : > { %v1194_v1 = vadd.f32 %v1193_v63, %v1015_v20  ;;  %v2155_v2 = vpop.f32.mrb[11].mxu1  ;;  %v2161_v5 = vpop.f32.mrb[15].mxu0  ;;  %v1344_v6 = vadd.f32 %v1342_v57, %v1191_v60 }
 0x327   : > { %v1353_v8 = vsel %vm1352_vm5, %v1344_v6, -inf  ;;  %v1345_v9 = vadd.f32 %v1342_v57, %v1194_v1 }
 0x328   : > { %1354 = vmax.xlane.f32.xlu0 %v1353_v8 }
 0x329   : > { %v1356_v10 = vsel %vm1352_vm5, %v1345_v9, -inf }
 0x32a   : > { %v1237_v11 = vpop.f32.mrb[12].mxu1  ;;  %1357 = vmax.xlane.f32.xlu1 %v1356_v10 }
 0x32b   : > { %v1238_v12 = vadd.f32 %v1237_v11, %v1056_v44  ;;  %v2166_v13 = vpop.f32.mrb[13].mxu1 }
 0x32c   : > { %v1240_v14 = vpop.f32.mrb[14].mxu1 }
 0x32d   : > { %v1241_v7 = vadd.f32 %v1240_v14, %v1059_v47  ;;  %v2167_v16 = vpop.f32.mrb[15].mxu1  ;;  %v1346_v17 = vadd.f32 %v1342_v57, %v1238_v12  ;;  %v1284_v21 = vpop.f32.mrb[16].mxu0 }
 0x32e   : > { %v1285_v22 = vadd.f32 %v1284_v21, %v1100_v51  ;;  %v2172_v23 = vpop.f32.mrb[17].mxu0 }
 0x32f   : > { %v1359_v25 = vsel %vm1352_vm5, %v1346_v17, -inf  ;;  %v1347_v26 = vadd.f32 %v1342_v57, %v1241_v7  ;;  %v1287_v27 = vpop.f32.mrb[18].mxu0 }
 0x330   : > { %1360 = vmax.xlane.f32.xlu0 %v1359_v25  ;;  %v1288_v29 = vadd.f32 %v1287_v27, %v1103_v52  ;;  %v2173_v30 = vpop.f32.mrb[19].mxu0  ;;  %v1348_v32 = vadd.f32 %v1342_v57, %v1285_v22 }
 0x331   : > { %v1362_v24 = vsel %vm1352_vm5, %v1347_v26, -inf }
 0x332   : > { %v1331_v31 = vpop.f32.mrb[16].mxu1  ;;  %v1365_v19 = vsel %vm1352_vm5, %v1348_v32, -inf  ;;  %v1349_v34 = vadd.f32 %v1342_v57, %v1288_v29 }
 0x333   : > { %v1332_v33 = vadd.f32 %v1331_v31, %v1144_v58  ;;  %v2178_v18 = vpop.f32.mrb[17].mxu1  ;;  %1366 = vmax.xlane.f32.xlu1 %v1365_v19 }
 0x334   : > { %v1334_v35 = vpop.f32.mrb[18].mxu1  ;;  %1363 = vmax.xlane.f32.xlu0 %v1362_v24  ;;  %v1368_v38 = vsel %vm1352_vm5, %v1349_v34, -inf }
 0x335   : > { %v1335_v36 = vadd.f32 %v1334_v35, %v1147_v62  ;;  %v2179_v37 = vpop.f32.mrb[19].mxu1  ;;  %v1350_v3 = vadd.f32 %v1342_v57, %v1332_v33 }
 0x337   : > { %v1371_v4 = vsel %vm1352_vm5, %v1350_v3, -inf  ;;  %v1351_v39 = vadd.f32 %v1342_v57, %v1335_v36 }
 0x338   : > { %1372 = vmax.xlane.f32.xlu1 %v1371_v4  ;;  %1369 = vmax.xlane.f32.xlu0 %v1368_v38 }
 0x339   : > { %v1374_v40 = vsel %vm1352_vm5, %v1351_v39, -inf }
 0x33c   : > { %1375 = vmax.xlane.f32.xlu0 %v1374_v40 }
 0x349   : > { %2369 = vrot.lane.b32.xlu1 %v3103_v41, %s2604_s10  ;;  %s2525_s10 = scalar_lea.vmem %s2524_s25, 512 }
 0x34a   : > { %p2527_p7 = scmp.lt.s32.totalorder %s2525_s10, %s2519_s18 }
 0x34c   : > { %p2528_p8 = por %p2527_p7, %p2526_p4 }
 0x34e   : > { %p2529_p11 = pnand %p2528_p8, %p2522_p3 }
 0x3b5   : > { %v1355_v42 = vpop.xlane.xlu0 %1354 }
 0x3b6   : > { %v1377_v15 = vsub.f32 %v1344_v6, %v1355_v42 }
 0x3b7   : > { %v1358_v20 = vpop.xlane.xlu1 %1357 }
 0x3b8   : > { %v1385_v43 = vmul.f32 1.442695, %v1377_v15  ;;  %v1378_v44 = vsub.f32 %v1345_v9, %v1358_v20 }
 0x3ba   : > { %2393 = vpow2.f32 %v1385_v43  ;;  %v1387_v46 = vmul.f32 1.442695, %v1378_v44 }
 0x3bc   : > { %2395 = vpow2.f32 %v1387_v46 }
 0x3bd   : > { %v1361_v47 = vpop.xlane.xlu0 %1360 }
 0x3be   : > { %v1379_v48 = vsub.f32 %v1346_v17, %v1361_v47 }
 0x3c0   : > { %v1389_v49 = vmul.f32 1.442695, %v1379_v48  ;;  %v1367_v50 = vpop.xlane.xlu1 %1366 }
 0x3c1   : > { %v1364_v28 = vpop.xlane.xlu0 %1363  ;;  %v1381_v51 = vsub.f32 %v1348_v32, %v1367_v50 }
 0x3c2   : > { %2397 = vpow2.f32 %v1389_v49  ;;  %v1380_v53 = vsub.f32 %v1347_v26, %v1364_v28 }
 0x3c3   : > { %v1393_v54 = vmul.f32 1.442695, %v1381_v51 }
 0x3c4   : > { %v2394_v52 = vpop.eup %2393  ;;  %v1391_v55 = vmul.f32 1.442695, %v1380_v53 }
 0x3c5   : > { %v1373_v56 = vpop.xlane.xlu1 %1372  ;;  %v1370_v57 = vpop.xlane.xlu0 %1369  ;;  %v1401_v58 = vsel %vm1352_vm5, %v2394_v52, 0.0  ;;  %2399 = vpow2.f32 %v1393_v54 }
 0x3c6   : > { %v2396_v59 = vpop.eup %2395  ;;  %v1383_v60 = vsub.f32 %v1350_v3, %v1373_v56  ;;  %v1382_v61 = vsub.f32 %v1349_v34, %v1370_v57  ;;  %1402 = vadd.xlane.f32.xlu1 %v1401_v58  ;;  %2401 = vpow2.f32 %v1391_v55 }
 0x3c7   : > { %v1404_v45 = vsel %vm1352_vm5, %v2396_v59, 0.0 }
 0x3c8   : > { %v1397_v62 = vmul.f32 1.442695, %v1383_v60  ;;  %v1395_v63 = vmul.f32 1.442695, %v1382_v61  ;;  %1405 = vadd.xlane.f32.xlu0 %v1404_v45 }
 0x3c9   : > { %v2370_v1 = vpop.permute.xlu1 %2369  ;;  %v1376_v2 = vpop.xlane.xlu0 %1375 }
 0x3ca   : > { %2403 = vpow2.f32 %v1397_v62  ;;  %v2372_v5 = vunpack.i.h.bf16 %v2370_v1  ;;  %v2371_v6 = vunpack.i.l.bf16 %v2370_v1  ;;  %v1384_v8 = vsub.f32 %v1351_v39, %v1376_v2 }
 0x3cb   : > { %2405 = vpow2.f32 %v1395_v63 }
 0x3cc   : > { %v2398_v9 = vpop.eup %2397  ;;  %v963_v10 = vpack.c.bf16 %v2372_v5, %v2371_v6  ;;  %v1399_v11 = vmul.f32 1.442695, %v1384_v8 }
 0x3cd   : > { %v1407_v12 = vsel %vm1352_vm5, %v2398_v9, 0.0 }
 0x3ce   : > { %2407 = vpow2.f32 %v1399_v11  ;;  %1408 = vadd.xlane.f32.xlu1 %v1407_v12  ;;  %2187 = vmatpush3.bf16.msra.mxu1 %v963_v10 }
 0x3cf   : > { %2198 = vmatprep.subr.bf16.mxu1 %v2594_v0  ;;  %v2400_v13 = vpop.eup %2399 }
 0x3d0   : > { %v2402_v14 = vpop.eup %2401  ;;  %v1413_v7 = vsel %vm1352_vm5, %v2400_v13, 0.0 }
 0x3d1   : > { %v1410_v16 = vsel %vm1352_vm5, %v2402_v14, 0.0 }
 0x3d2   : > { %1414 = vadd.xlane.f32.xlu1 %v1413_v7  ;;  %1411 = vadd.xlane.f32.xlu0 %v1410_v16 }
 0x3d4   : > { %v2404_v17 = vpop.eup %2403 }
 0x3d5   : > { %v2406_v21 = vpop.eup %2405  ;;  %v1419_v22 = vsel %vm1352_vm5, %v2404_v17, 0.0 }
 0x3d6   : > { %1420 = vadd.xlane.f32.xlu1 %v1419_v22  ;;  %v1416_v23 = vsel %vm1352_vm5, %v2406_v21, 0.0  ;;  %v2433_v22 = vld [vmem:[%s2850_s29] sm:$0xff] }
 0x3d7   : > { %1417 = vadd.xlane.f32.xlu0 %v1416_v23 }
 0x3d8   : > { %v2408_v25 = vpop.eup %2407 }
 0x3d9   : > { %v1422_v26 = vsel %vm1352_vm5, %v2408_v25, 0.0 }
 0x3db   : > { %1423 = vadd.xlane.f32.xlu0 %v1422_v26 }
 0x3e7   : > { %2379 = vrot.lane.b32.xlu1 %v3103_v41, %s2606_s30  ;;  %s3304_s30 = sld [smem:[#allocation20_spill]] }
 0x3f1   : > { %2374 = vrot.lane.b32.xlu0 %v3103_v41, %s2605_s28 }
 0x453   : > { %v1403_v27 = vpop.xlane.xlu1 %1402 }
 0x454   : > { %2409 = vrcp.f32 %v1403_v27  ;;  %v2434_v27 = vld [vmem:[%s2850_s29 + $0x8] sm:$0xff] }
 0x455   : > { %v1406_v29 = vpop.xlane.xlu0 %1405 }
 0x456   : > { %2411 = vrcp.f32 %v1406_v29 }
 0x45b   : > { %v1409_v30 = vpop.xlane.xlu1 %1408 }
 0x45c   : > { %2413 = vrcp.f32 %v1409_v30 }
 0x45e   : > { %v2410_v32 = vpop.eup %2409 }
 0x45f   : > { %v1415_v31 = vpop.xlane.xlu1 %1414  ;;  %v1412_v18 = vpop.xlane.xlu0 %1411  ;;  %v1433_v19 = vmul.f32 %v2410_v32, %v2394_v52 }
 0x460   : > { %v2412_v33 = vpop.eup %2411  ;;  %2415 = vrcp.f32 %v1412_v18 }
 0x461   : > { %v1434_v24 = vmul.f32 %v2412_v33, %v2396_v59  ;;  %2417 = vrcp.f32 %v1415_v31 }
 0x463   : > { %v1421_v34 = vpop.xlane.xlu1 %1420  ;;  %v1441_v35 = vpack.c.bf16 %v1434_v24, %v1433_v19 }
 0x464   : > { %v1418_v36 = vpop.xlane.xlu0 %1417 }
 0x465   : > { %2419 = vrcp.f32 %v1418_v36  ;;  %2183 = vmatmul.mubr.msk.bf16.vlgmr.msra.gmra.mrb[20].mxu0 %vm1352_vm5, %v1441_v35 }
 0x466   : > { %2194 = vmatprep.mubr.msk.bf16.mxu0 %vm2595_vm0, %v2594_v0  ;;  %2421 = vrcp.f32 %v1421_v34  ;;  %v2414_v3 = vpop.eup %2413 }
 0x467   : > { %v2380_v41 = vpop.permute.xlu1 %2379  ;;  %v1435_v40 = vmul.f32 %v2414_v3, %v2398_v9  ;;  %v2388_v3 = vld [vmem:[%s3267_s11 + $0x8] sm:$0xff]  }
 0x468   : > { %v1424_v37 = vpop.xlane.xlu0 %1423  ;;  %v2382_v38 = vunpack.i.h.bf16 %v2380_v41  ;;  %v2381_v39 = vunpack.i.l.bf16 %v2380_v41 }
 0x469   : > { %2423 = vrcp.f32 %v1424_v37  ;;  %v2387_v37 = vld [vmem:[%s3267_s11] sm:$0xff]  }
 0x46a   : > { %v2416_v4 = vpop.eup %2415  ;;  %v965_v48 = vpack.c.bf16 %v2382_v38, %v2381_v39  ;;  %v2390_v38 = vld [vmem:[%s3269_s13 + $0x8] sm:$0xff]  }
 0x46b   : > { %v1436_v42 = vmul.f32 %v2416_v4, %v2402_v14  ;;  %v2418_v20 = vpop.eup %2417  ;;  %v2389_v4 = vld [vmem:[%s3269_s13] sm:$0xff]  }
 0x46c   : > { %v2375_v15 = vpop.permute.xlu0 %2374  ;;  %v1437_v50 = vmul.f32 %v2418_v20, %v2400_v13 }
 0x46d   : > { %v2377_v43 = vunpack.i.h.bf16 %v2375_v15  ;;  %v2376_v44 = vunpack.i.l.bf16 %v2375_v15  ;;  %v1442_v46 = vpack.c.bf16 %v1436_v42, %v1435_v40 }
 0x46f   : > { %v2420_v47 = vpop.eup %2419  ;;  %v964_v49 = vpack.c.bf16 %v2377_v43, %v2376_v44  ;;  %2189 = vmatmul.mubr.msk.bf16.vlgmr.msra.gmra.mrb[20].mxu1 %vm1352_vm5, %v1442_v46  ;;  %v2057_v46 = vld [vmem:[#allocation8] ss:$0 sm:$0xff] }
 0x470   : > { %v1438_v28 = vmul.f32 %v2420_v47, %v2406_v21  ;;  %v2422_v51 = vpop.eup %2421  ;;  %2199 = vmatpush3.bf16.msra.mxu1 %v965_v48  ;;  %2200 = vmatprep.mubr.msk.bf16.mxu1 %vm2595_vm0, %v2594_v0 }
 0x471   : > { %2193 = vmatpush3.bf16.msra.mxu0 %v964_v49  ;;  %2212 = vmatprep.subr.bf16.mxu1 %v2594_v0  ;;  %v1439_v54 = vmul.f32 %v2422_v51, %v2404_v17 }
 0x472   : > { %v1443_v53 = vpack.c.bf16 %v1438_v28, %v1437_v50  ;;  %2204 = vmatprep.subr.bf16.mxu0 %v2594_v0  ;;  %v2058_v28 = vld [vmem:[%s3264_s8] ss:$0 sm:$0xff] }
 0x473   : > { %v2424_v52 = vpop.eup %2423 }
 0x474   : > { %v1440_v55 = vmul.f32 %v2424_v52, %v2408_v25  ;;  %2195 = vmatmul.mubr.msk.bf16.vlgmr.msra.gmra.mrb[24].mxu0 %vm1352_vm5, %v1443_v53 }
 0x475   : > { %2208 = vmatprep.mubr.msk.bf16.mxu0 %vm2595_vm0, %v2594_v0  ;;  %2205 = vmatpush3.bf16.msra.mxu0 %v2387_v37  ;;  %v2070_v37 = vld [vmem:[%s3304_s30] ss:$0 sm:$0xff] }
 0x476   : > { %v1444_v56 = vpack.c.bf16 %v1440_v55, %v1439_v54  ;;  %2206 = vmatprep.subr.bf16.mxu0 %v2594_v0  ;;  %v2391_v55 = vld [vmem:[%s3269_s13 + $0x10] sm:$0xff]  }
 0x478   : > { %2201 = vmatmul.mubr.msk.bf16.vlgmr.msra.gmra.mrb[24].mxu1 %vm1352_vm5, %v1444_v56  ;;  %v2392_v56 = vld [vmem:[%s3269_s13 + $0x18] sm:$0xff]  }
 0x479   : > { %2220 = vmatprep.mubr.msk.bf16.mxu1 %vm2595_vm0, %v2594_v0  ;;  %2207 = vmatpush3.bf16.msra.mxu0 %v2388_v3 }
 0x47a   : > { %2213 = vmatpush3.bf16.msra.mxu1 %v2389_v4 }
 0x47b   : > { %2214 = vmatprep.subr.bf16.mxu1 %v2594_v0 }
 0x47e   : > { %2215 = vmatpush3.bf16.msra.mxu1 %v2390_v38 }
 0x47f   : > { %2216 = vmatprep.subr.bf16.mxu1 %v2594_v0 }
 0x482   : > { %2217 = vmatpush3.bf16.msra.mxu1 %v2391_v55 }
 0x483   : > { %2218 = vmatprep.subr.bf16.mxu1 %v2594_v0  ;;  %v2063_v0 = vld [vmem:[%s3270_s14] ss:$0 sm:$0xff] }
 0x486   : > { %2219 = vmatpush3.bf16.msra.mxu1 %v2392_v56 }
 0x538   : > { %v1482_v57 = vpop.f32.mrb[20].mxu0 }
 0x539   : > { %1621 = vst.msk [vmem:[#allocation2] sm:$0xff] %vm971_vm2, %v1482_v57  ;;  %v2184_v58 = vpop.f32.mrb[21].mxu0  ;;  %v2059_v57 = vld [vmem:[%s3268_s12] ss:$0 sm:$0xff] }
 0x53a   : > { %v1485_v59 = vpop.f32.mrb[22].mxu0 }
 0x53b   : > { %1622 = vst.msk [vmem:[#allocation2 + $0x8] sm:$0xff] %vm971_vm2, %v1485_v59  ;;  %v2185_v60 = vpop.f32.mrb[23].mxu0 }
 0x542   : > { %v1526_v61 = vpop.f32.mrb[20].mxu1 }
 0x543   : > { %1625 = vrot.lane.b32.xlu1 %v1526_v61, %s3284_s21  ;;  %v2190_v45 = vpop.f32.mrb[21].mxu1 }
 0x544   : > { %v1529_v62 = vpop.f32.mrb[22].mxu1 }
 0x545   : > { %1627 = vrot.lane.b32.xlu0 %v1529_v62, %s3284_s21  ;;  %v2191_v63 = vpop.f32.mrb[23].mxu1 }
 0x547   : > { %v1570_v1 = vpop.f32.mrb[24].mxu0 }
 0x548   : > { %1636 = vrot.lane.b32.xlu1 %v1570_v1, %s2599_s26  ;;  %v2196_v2 = vpop.f32.mrb[25].mxu0 }
 0x549   : > { %v1573_v5 = vpop.f32.mrb[26].mxu0 }
 0x54a   : > { %1638 = vrot.lane.b32.xlu0 %v1573_v5, %s2599_s26  ;;  %v2197_v6 = vpop.f32.mrb[27].mxu0 }
 0x54b   : > { %v1614_v8 = vpop.f32.mrb[24].mxu1 }
 0x54c   : > { %v2202_v9 = vpop.f32.mrb[25].mxu1  ;;  %1647 = vrot.lane.b32.xlu1 %v1614_v8, %s2601_s15 }
 0x54d   : > { %v1617_v10 = vpop.f32.mrb[26].mxu1 }
 0x54e   : > { %v2203_v11 = vpop.f32.mrb[27].mxu1  ;;  %1649 = vrot.lane.b32.xlu0 %v1617_v10, %s2601_s15  ;;  %s3306_s15 = sld [smem:[#allocation21_spill]] }
 0x554   : > { %s3208_s21 = scalar_lea.hbm %s3306_s15, %s2077_s16 }
 0x5b5   : > { %v1626_v12 = vpop.permute.xlu1 %1625 }
 0x5b6   : > { %1632 = vst.msk [vmem:[#allocation2] sm:$0xff] %vm1631_vm6, %v1626_v12 }
 0x5b7   : > { %v1628_v13 = vpop.permute.xlu0 %1627 }
 0x5b8   : > { %1633 = vst.msk [vmem:[#allocation2 + $0x8] sm:$0xff] %vm1631_vm6, %v1628_v13 }
 0x5ba   : > { %v1637_v14 = vpop.permute.xlu1 %1636 }
 0x5bb   : > { %1643 = vst.msk [vmem:[#allocation2] sm:$0xff] %vm1642_vm7, %v1637_v14 }
 0x5bc   : > { %v1639_v7 = vpop.permute.xlu0 %1638 }
 0x5bd   : > { %1644 = vst.msk [vmem:[#allocation2 + $0x8] sm:$0xff] %vm1642_vm7, %v1639_v7 }
 0x5be   : > { %v1648_v16 = vpop.permute.xlu1 %1647 }
 0x5bf   : > { %1654 = vst.msk [vmem:[#allocation2] sm:$0xff] %vm1653_vm8, %v1648_v16 }
 0x5c0   : > { %v1650_v17 = vpop.permute.xlu0 %1649 }
 0x5c1   : > { %1655 = vst.msk [vmem:[#allocation2 + $0x8] sm:$0xff] %vm1653_vm8, %v1650_v17 }
 0x5c6   : > { %v1656_v21 = vld [vmem:[#allocation2] sm:$0xff] }
 0x5c7   : > { %v1658_v23 = vadd.f32 %v2433_v22, %v1656_v21 }
 0x5c8   : > { %v1657_v25 = vld [vmem:[#allocation2 + $0x8] sm:$0xff] }
 0x5c9   : > { %v1662_v26 = vsel %vm568_vm1, %v1658_v23, 0.0  ;;  %v1659_v29 = vadd.f32 %v2434_v27, %v1657_v25 }
 0x5ca   : > { %1663 = vadd.xlane.f32.xlu1 %v1662_v26 }
 0x5cb   : > { %v1665_v30 = vsel %vm568_vm1, %v1659_v29, 0.0 }
 0x5cc   : > { %1666 = vadd.xlane.f32.xlu0 %v1665_v30 }
 0x657   : > { %v1664_v32 = vpop.xlane.xlu1 %1663 }
 0x658   : > { %v1669_v31 = vmul.f32 0.03125, %v1664_v32 }
 0x659   : > { %v1667_v33 = vpop.xlane.xlu0 %1666 }
 0x65a   : > { %v1671_v18 = vsub.f32 %v1658_v23, %v1669_v31  ;;  %v1670_v19 = vmul.f32 0.03125, %v1667_v33 }
 0x65c   : > { %v1672_v24 = vsub.f32 %v1659_v29, %v1670_v19  ;;  %v1673_v34 = vmul.f32 %v1671_v18, %v1671_v18 }
 0x65e   : > { %v1675_v35 = vsel %vm568_vm1, %v1673_v34, 0.0  ;;  %v1674_v36 = vmul.f32 %v1672_v24, %v1672_v24 }
 0x65f   : > { %1676 = vadd.xlane.f32.xlu0 %v1675_v35  ;;  %v2069_v35 = vld [vmem:[%s3265_s9] ss:$0 sm:$0xff] }
 0x660   : > { %v1678_v41 = vsel %vm568_vm1, %v1674_v36, 0.0 }
 0x661   : > { %1679 = vadd.xlane.f32.xlu1 %v1678_v41 }
 0x6ec   : > { %v1677_v39 = vpop.xlane.xlu0 %1676 }
 0x6ed   : > { %v1681_v40 = vmul.f32 0.03125, %v1677_v39 }
 0x6ee   : > { %v1680_v42 = vpop.xlane.xlu1 %1679 }
 0x6ef   : > { %v1683_v15 = vadd.f32 1e-05, %v1681_v40  ;;  %v1682_v20 = vmul.f32 0.03125, %v1680_v42 }
 0x6f1   : > { %2425 = vrsqrt.f32 %v1683_v15  ;;  %v1684_v43 = vadd.f32 1e-05, %v1682_v20 }
 0x6f3   : > { %2427 = vrsqrt.f32 %v1684_v43 }
 0x6fb   : > { %v2426_v44 = vpop.eup %2425 }
 0x6fc   : > { %v1687_v47 = vmul.f32 %v2426_v44, %v1671_v18 }
 0x6fd   : > { %v2428_v48 = vpop.eup %2427 }
 0x6fe   : > { %v1695_v49 = vmul.f32 %v2057_v46, %v1687_v47  ;;  %v1688_v50 = vmul.f32 %v2428_v48, %v1672_v24 }
 0x700   : > { %v1696_v51 = vmul.f32 %v2057_v46, %v1688_v50  ;;  %v1703_v53 = vadd.f32 %v2058_v28, %v1695_v49 }
 0x702   : > { %v1704_v52 = vadd.f32 %v2058_v28, %v1696_v51 }
 0x704   : > { %v1705_v54 = vpack.c.bf16 %v1704_v52, %v1703_v53 }
 0x706   : > { %2209 = vmatmul.mubr.msk.bf16.vlgmr.msra.gmra.mrb[28].mxu0 %vm568_vm1, %v1705_v54 }
 0x7d9   : > { %v1766_v58 = vpop.f32.mrb[28].mxu0 }
 0x7da   : > { %v1767_v59 = vadd.f32 %v2059_v57, %v1766_v58  ;;  %v2210_v60 = vpop.f32.mrb[29].mxu0 }
 0x7db   : > { %v1769_v61 = vpop.f32.mrb[30].mxu0 }
 0x7dc   : > { %v1770_v45 = vadd.f32 %v2059_v57, %v1769_v61  ;;  %v2211_v62 = vpop.f32.mrb[31].mxu0  ;;  %v1773_v63 = vmax.f32 %v1767_v59, 0.0 }
 0x7de   : > { %v1774_v1 = vmax.f32 %v1770_v45, 0.0 }
 0x7e0   : > { %v1775_v2 = vpack.c.bf16 %v1774_v1, %v1773_v63 }
 0x7e2   : > { %2221 = vmatmul.mubr.msk.bf16.vlgmr.msra.gmra.mrb[28].mxu1 %vm1815_vm9, %v1775_v2 }
 0x8b5   : > { %v1853_v5 = vpop.f32.mrb[28].mxu1 }
 0x8b6   : > { %v1854_v6 = vadd.f32 %v2063_v0, %v1853_v5  ;;  %v2222_v8 = vpop.f32.mrb[29].mxu1 }
 0x8b7   : > { %v1856_v9 = vpop.f32.mrb[30].mxu1 }
 0x8b8   : > { %v1857_v10 = vadd.f32 %v2063_v0, %v1856_v9  ;;  %v2223_v11 = vpop.f32.mrb[31].mxu1  ;;  %v1860_v12 = vadd.f32 %v1854_v6, %v1703_v53 }
 0x8ba   : > { %v1864_v13 = vsel %vm568_vm1, %v1860_v12, 0.0  ;;  %v1861_v14 = vadd.f32 %v1857_v10, %v1704_v52 }
 0x8bb   : > { %1865 = vadd.xlane.f32.xlu0 %v1864_v13 }
 0x8bc   : > { %v1867_v7 = vsel %vm568_vm1, %v1861_v14, 0.0 }
 0x8bd   : > { %1868 = vadd.xlane.f32.xlu1 %v1867_v7 }
 0x948   : > { %v1866_v16 = vpop.xlane.xlu0 %1865 }
 0x949   : > { %v1870_v17 = vmul.f32 0.03125, %v1866_v16 }
 0x94a   : > { %v1869_v21 = vpop.xlane.xlu1 %1868 }
 0x94b   : > { %v1872_v22 = vsub.f32 %v1860_v12, %v1870_v17  ;;  %v1871_v23 = vmul.f32 0.03125, %v1869_v21 }
 0x94d   : > { %v1873_v25 = vsub.f32 %v1861_v14, %v1871_v23  ;;  %v1874_v26 = vmul.f32 %v1872_v22, %v1872_v22 }
 0x94f   : > { %v1876_v27 = vsel %vm568_vm1, %v1874_v26, 0.0  ;;  %v1875_v29 = vmul.f32 %v1873_v25, %v1873_v25 }
 0x950   : > { %1877 = vadd.xlane.f32.xlu0 %v1876_v27 }
 0x951   : > { %v1879_v30 = vsel %vm568_vm1, %v1875_v29, 0.0 }
 0x952   : > { %1880 = vadd.xlane.f32.xlu1 %v1879_v30 }
 0x9dd   : > { %v1878_v32 = vpop.xlane.xlu0 %1877 }
 0x9de   : > { %v1882_v31 = vmul.f32 0.03125, %v1878_v32 }
 0x9df   : > { %v1881_v33 = vpop.xlane.xlu1 %1880 }
 0x9e0   : > { %v1884_v18 = vadd.f32 1e-05, %v1882_v31  ;;  %v1883_v19 = vmul.f32 0.03125, %v1881_v33 }
 0x9e2   : > { %2429 = vrsqrt.f32 %v1884_v18  ;;  %v1885_v24 = vadd.f32 1e-05, %v1883_v19 }
 0x9e4   : > { %2431 = vrsqrt.f32 %v1885_v24 }
 0x9ec   : > { %v2430_v34 = vpop.eup %2429 }
 0x9ed   : > { %v1888_v36 = vmul.f32 %v2430_v34, %v1872_v22 }
 0x9ee   : > { %v2432_v41 = vpop.eup %2431 }
 0x9ef   : > { %v1896_v3 = vmul.f32 %v2069_v35, %v1888_v36  ;;  %v1889_v4 = vmul.f32 %v2432_v41, %v1873_v25 }
 0x9f1   : > { %v1904_v38 = vadd.f32 %v2070_v37, %v1896_v3  ;;  %v1897_v39 = vmul.f32 %v2069_v35, %v1889_v4 }
 0x9f3   : > { %v1905_v40 = vadd.f32 %v2070_v37, %v1897_v39  ;;  %1906 = vst.msk [vmem:[%s536_s27] sm:$0xff] %vm568_vm1, %v1904_v38 }
 0x9f5   : > { %1907 = vst.msk [vmem:[%s536_s27 + $0x8] sm:$0xff] %vm568_vm1, %v1905_v40 }
 0x9f6   : > { %2532 = shalt.err (!%p2529_p11)
}
 0x9f7   : > { %s2533_s24 = scalar_lea.hbm %s3208_s21, 256  ;;  %s2537_s16 = scalar_lea.hbm %s3306_s15, 512 }
 0x9f8   : > { %p2534_p13 = scmp.ne.s32.totalorder %s3208_s21, %s2533_s24  ;;  %p2538_p6 = scmp.lt.u32.totalorder %s3208_s21, %s3306_s15 }
 0x9f9   : > { %p2539_p5 = scmp.lt.u32.totalorder %s2537_s16, %s2533_s24  ;;  %p2541_p12 = scmp.lt.u32.totalorder %s2533_s24, %s3208_s21 }
 0x9fa   : > { %p2535_p0 = pnand %p2534_p13, %p3307_p10 }
 0x9fb   : > { %p2540_p9 = por %p2539_p5, %p2538_p6 }
 0x9fc   : > { %p2536_p1 = pneg %p2535_p0 }
 0x9fd   : > { %p2542_p2 = por %p2541_p12, %p2540_p9 }
 0x9ff   : > { %p2543_p3 = pnand %p2542_p2, %p2536_p1 }
 0xa01   : > { %2546 = shalt.err (!%p2543_p3)
}
 0xa02   : > { %s2608_s26 = smov 128   ;;  %s3308_s18 = smov 8  }
 0xa03   : > { %2236 = dma.vmem_to_hbm [thread:$0]  (%p3307_p10), %s3211_s20, 256, %s3208_s21, %s3214_s22, %s2608_s26, %s2608_s26, %s3308_s18  }
 0xa04 PF: > { %s3309_s17 = sld [smem:[#allocation15_spill]]  ;;  %s3310_s25 = sld [smem:[#allocation13_spill]] }
 0xa05   : > { %s3311_s10 = sld [smem:[#allocation19_spill]] }
 0xa0a   : > { %p2258_p4 = scmp.ge.s32.totalorder %s3309_s17, 2  ;;  %s1937_s28 = sand.u32 1, %s3310_s25  }
 0xa0b   : > { %p3312_p7 = scmp.ne.s32.totalorder %s3311_s10, 0  ;;  %s1938_s24 = scalar_lea.sflag [#allocation5], %s1937_s28 }
 0xa0d   : > { %p2249_p8 = pnand %p2258_p4, %p3312_p7 }
 0xa0f   : > { %2572 = dma.done.wait (!%p2249_p8), %s1938_s24, 256  }
 0xa10   : > { %2574 = vsyncadd (!%p2249_p8), %s1938_s24, 4294967040  ;;  %s3313_s21 = sld [smem:[#allocation16_spill]]  ;;  %s3314_s30 = sld [smem:[#allocation14_spill]] }
 0xa11   : > { %s3315_s20 = sld [smem:[#allocation17_spill]]  ;;  %s3316_s18 = smov %s2581_s19 }
 0xa16   : > { %p27_p11 = scmp.ge.s32.totalorder %s3313_s21, 4   ;;  %s3317_s19 = smov %s3314_s30 }
 0xa18   :  { %29 = sbr.rel (!%p27_p11) target bundleno = 8 (0x8), region = 131 }
 0xa1f   :  { %1943 = vsyncpa [#allocation4], 1 }
 0xa20   :  { %1945 = vsyncpa [#allocation4 + $0x1], 1 }
 0xa21   :  { %1946 = vsyncpa [#allocation7], 1 }
 0xa22   :  { %1947 = vsyncpa [#allocation5], 1 }
 0xa23   :  { %1949 = vsyncpa [#allocation5 + $0x1], 1 }

</bundles_post_ra>
